<compile_context>
chip_gen: v7x
topology: tpu7x:2x2x1
jax: 0.10.0
libtpu: 0.0.40
codegen_flags: <defaults>
</compile_context>

<pallas_src>
import functools

import jax
import jax.numpy as jnp
import numpy as np
from jax.experimental import pallas as pl
from jax.experimental.pallas import tpu as pltpu

LANE = 128
FPAD = 128      # feature dim padded to a full lane width
AUXPAD = 128    # lane-dense slab holding the 13 aux-head outputs
N_AUX = 13


def _round_up(x, m):
    return (x + m - 1) // m * m


# ------------------------------ fused kernel --------------------------------

def _make_fused_kernel(*, n_t, tile_b, tile_hw, hw, ncpad, use_acc):
    """Conv-as-matmul + ReLU + GAP + classifier + aux heads, one kernel."""
    inv_hw = 1.0 / hw
    pad_rows = float(n_t * tile_hw - hw)   # zero-padded hw rows per batch row

    def _conv_gap(cols, wc, bc):
        # MXU: (tile_b*tile_hw, C*9) bf16 @ (C*9, 128) bf16 -> f32
        conv = jnp.dot(cols, wc, preferred_element_type=jnp.float32)
        conv = jnp.maximum(conv + bc, 0.0)                       # bias + ReLU (f32)
        # Per-batch-row GAP partial sums.  Rows inside a step are b-major /
        # hw-minor, so each batch row is a static, 8-aligned sublane slice
        # followed by a plain cross-sublane reduce.
        parts = [jnp.sum(conv[b * tile_hw:(b + 1) * tile_hw, :],
                         axis=0, keepdims=True)
                 for b in range(tile_b)]
        return jnp.concatenate(parts, axis=0)                    # (tile_b, FPAD)

    def _heads(feat_sum, bc, wh, bh, ss, ts, ls, logits_ref, aux_ref):
        if pad_rows:
            # Zero-padded hw rows each contributed exactly relu(bias); remove.
            feat_sum = feat_sum - pad_rows * jnp.maximum(bc, 0.0)
        # GAP mean.  Dropout == identity at inference.
        feat = (feat_sum * inv_hw).astype(jnp.bfloat16)          # (tile_b, FPAD)
        raw = jnp.dot(feat, wh, preferred_element_type=jnp.float32) + bh
        logits_ref[...] = raw[:, :ncpad]                         # padded classifier
        a = raw[:, ncpad:]                                       # (tile_b, AUXPAD)
        aux_ref[...] = ss * jax.nn.sigmoid(a) + ts * jnp.tanh(a) + ls * a

    if not use_acc:
        # n_t == 1: straight-line body, no accumulator / pl.when machinery.
        def kernel(cols_ref, wc_ref, bc_ref, wh_ref, bh_ref,
                   ss_ref, ts_ref, ls_ref, logits_ref, aux_ref):
            s = _conv_gap(cols_ref[...], wc_ref[...], bc_ref[...])
            _heads(s, bc_ref[...], wh_ref[...], bh_ref[...],
                   ss_ref[...], ts_ref[...], ls_ref[...], logits_ref, aux_ref)
        return kernel

    def kernel(cols_ref, wc_ref, bc_ref, wh_ref, bh_ref,
               ss_ref, ts_ref, ls_ref, logits_ref, aux_ref, acc_ref):
        t = pl.program_id(1)

        @pl.when(t == 0)
        def _init():
            acc_ref[...] = jnp.zeros_like(acc_ref)

        acc_ref[...] += _conv_gap(cols_ref[...], wc_ref[...], bc_ref[...])

        @pl.when(t == pl.num_programs(1) - 1)
        def _finalize():
            _heads(acc_ref[...], bc_ref[...], wh_ref[...], bh_ref[...],
                   ss_ref[...], ts_ref[...], ls_ref[...], logits_ref, aux_ref)

    return kernel


# ------------------------------ host-side glue -------------------------------

def _im2col_nhwc(x):
    """NCHW (B,C,H,W) -> (B, H*W, C*9) columns for a 3x3 / stride 1 / pad 1 conv.

    Column index = c*9 + kh*3 + kw, matching conv_w.reshape(F, C_in*9).
    """
    B, C, H, W = x.shape
    xh = jnp.transpose(x, (0, 2, 3, 1))                        # NHWC
    xp = jnp.pad(xh, ((0, 0), (1, 1), (1, 1), (0, 0)))
    taps = [xp[:, dh:dh + H, dw:dw + W, :]
            for dh in range(3) for dw in range(3)]
    cols = jnp.stack(taps, axis=-1)                            # (B, H, W, C, 9)
    return cols.reshape(B, H * W, C * 9)


def _split_aux(a):
    """(B, >=13) packed aux lanes -> PyTorch aux_outputs dict."""
    return {
        "transform_type_logits": a[:, 0:4],
        "severity_noise": a[:, 4:5],
        "severity_rotation": a[:, 5:6],
        "severity_affine": a[:, 6:7],
        "rotation_angle": a[:, 7:8],
        "noise_std": a[:, 8:9],
        "translate_x": a[:, 9:10],
        "translate_y": a[:, 10:11],
        "shear_x": a[:, 11:12],
        "shear_y": a[:, 12:13],
    }


def flexible_blended_ttt_forward(packed, x, *, num_classes=200, aux_only=False,
                                 max_tile_hw=512, tile_b=8):
    """x: NCHW (B, C, H, W) -> (logits (B, num_classes), aux_outputs dict)."""
    B, C, H, W = x.shape
    HW = H * W
    KC = C * 9
    f_pad = packed["wc"].shape[1]
    ncpad = _round_up(num_classes, LANE)
    ntot = ncpad + AUXPAD
    assert packed["wc"].shape == (KC, f_pad)
    assert packed["wh"].shape == (f_pad, ntot)

    # Batch padded to a sublane multiple: all stores are unmasked 8-row tiles
    # and the head matmul is batched over the whole tile.
    b_pad = _round_up(B, tile_b)
    n_b = b_pad // tile_b

    # HW tiling: single step when the whole image fits (tile_hw == HW_pad),
    # otherwise 512-row tiles (multiple of 256 for the v6e/v7x MXU, 128-aligned
    # for v5e) with an f32 accumulator across the reduction axis.
    tile_hw = min(max_tile_hw, _round_up(HW, 8))
    hw_pad = _round_up(HW, tile_hw)
    n_t = hw_pad // tile_hw
    m_rows = tile_b * tile_hw
    use_acc = n_t > 1

    # TODO(synk): host-side im2col inflates input HBM traffic 9x; move in-kernel
    # at production image sizes.
    cols = _im2col_nhwc(x).astype(jnp.bfloat16)                # (B, HW, KC)
    cols = jnp.pad(cols, ((0, b_pad - B), (0, hw_pad - HW), (0, 0)))
    # Step-major layout: (n_b, n_t, tile_b*tile_hw, KC), b-major within a step.
    cols = cols.reshape(n_b, tile_b, n_t, tile_hw, KC)
    cols = cols.transpose(0, 2, 1, 3, 4).reshape(n_b, n_t, m_rows, KC)

    kernel = _make_fused_kernel(n_t=n_t, tile_b=tile_b, tile_hw=tile_hw,
                                hw=HW, ncpad=ncpad, use_acc=use_acc)

    # Explicit VMEM budget (v7x: 64 MiB physical, 32 MiB default scoped).
    cols_block_bytes = 2 * m_rows * KC                         # bf16
    weight_bytes = (2 * KC * f_pad + 4 * f_pad                 # wc bf16 + bc f32
                    + 2 * f_pad * ntot + 4 * ntot              # wh bf16 + bh f32
                    + 3 * 4 * AUXPAD)                          # activation masks
    out_bytes = 4 * tile_b * ntot
    est = 2 * (cols_block_bytes + weight_bytes + out_bytes) + 4 * tile_b * f_pad
    vmem_limit = int(min(96 << 20, max(16 << 20, 4 * est)))

    in_specs = [
        pl.BlockSpec((pl.Squeezed(), pl.Squeezed(), m_rows, KC),
                     lambda b, t: (b, t, 0, 0)),                # cols (per step)
        pl.BlockSpec((KC, f_pad), lambda b, t: (0, 0)),         # conv W (bf16)
        pl.BlockSpec((1, f_pad), lambda b, t: (0, 0)),          # conv b (f32)
        pl.BlockSpec((f_pad, ntot), lambda b, t: (0, 0)),       # heads W (bf16)
        pl.BlockSpec((1, ntot), lambda b, t: (0, 0)),           # heads b (f32)
        pl.BlockSpec((1, AUXPAD), lambda b, t: (0, 0)),         # sigmoid*scale
        pl.BlockSpec((1, AUXPAD), lambda b, t: (0, 0)),         # tanh*scale
        pl.BlockSpec((1, AUXPAD), lambda b, t: (0, 0)),         # linear*scale
    ]
    out_specs = (
        pl.BlockSpec((tile_b, ncpad), lambda b, t: (b, 0)),
        pl.BlockSpec((tile_b, AUXPAD), lambda b, t: (b, 0)),
    )
    scratch = [pltpu.VMEM((tile_b, f_pad), jnp.float32)] if use_acc else []

    logits_pad, aux_pad = pl.pallas_call(
        kernel,
        out_shape=(jax.ShapeDtypeStruct((b_pad, ncpad), jnp.float32),
                   jax.ShapeDtypeStruct((b_pad, AUXPAD), jnp.float32)),
        grid=(n_b, n_t),
        in_specs=in_specs,
        out_specs=out_specs,
        scratch_shapes=scratch,
        compiler_params=pltpu.CompilerParams(
            dimension_semantics=("parallel", "arbitrary"),
            vmem_limit_bytes=vmem_limit),
    )(cols, packed["wc"], packed["bc"], packed["wh"], packed["bh"],
      packed["sig_scale"], packed["tanh_scale"], packed["lin_scale"])

    aux_outputs = _split_aux(aux_pad[:B])
    if aux_only:
        return aux_outputs
    return logits_pad[:B, :num_classes], aux_outputs


# ------------------------------ parameters ----------------------------------

def init_params(key, c_in=4, feature_dim=32, num_classes=200):
    """Raw params in PyTorch layouts (weight = (out, in), conv = (F, C, 3, 3))."""
    ks = jax.random.split(key, 18)

    def lin(kw, kb, out_d, in_d, s=0.05):
        return (jax.random.normal(kw, (out_d, in_d), jnp.float32) * s,
                jax.random.normal(kb, (out_d,), jnp.float32) * 0.01)

    conv_w = jax.random.normal(ks[0], (feature_dim, c_in, 3, 3), jnp.float32) * 0.05
    conv_b = jax.random.normal(ks[1], (feature_dim,), jnp.float32) * 0.01
    fc_w, fc_b = lin(ks[2], ks[3], num_classes, feature_dim)
    tt_w, tt_b = lin(ks[4], ks[5], 4, feature_dim)
    sn_w, sn_b = lin(ks[6], ks[7], 1, feature_dim)
    sr_w, sr_b = lin(ks[8], ks[9], 1, feature_dim)
    sa_w, sa_b = lin(ks[10], ks[11], 1, feature_dim)
    rot_w, rot_b = lin(ks[12], ks[13], 1, feature_dim)
    noi_w, noi_b = lin(ks[14], ks[15], 1, feature_dim)
    aff_w, aff_b = lin(ks[16], ks[17], 4, feature_dim)
    return dict(conv_w=conv_w, conv_b=conv_b, fc_w=fc_w, fc_b=fc_b,
                tt_w=tt_w, tt_b=tt_b, sn_w=sn_w, sn_b=sn_b,
                sr_w=sr_w, sr_b=sr_b, sa_w=sa_w, sa_b=sa_b,
                rot_w=rot_w, rot_b=rot_b, noi_w=noi_w, noi_b=noi_b,
                aff_w=aff_w, aff_b=aff_b)


def pack_params(p, num_classes=200):
    """One-time packing: transposes, lane padding (F->128), bf16 weights,
    head concat, activation masks with scales folded in."""
    F, c_in = p["conv_w"].shape[0], p["conv_w"].shape[1]
    assert F <= FPAD
    KC = c_in * 9
    ncpad = _round_up(num_classes, LANE)

    wc = jnp.zeros((KC, FPAD), jnp.float32).at[:, :F].set(p["conv_w"].reshape(F, KC).T)
    wc = wc.astype(jnp.bfloat16)                               # (C*9, 128) bf16
    bc = jnp.zeros((1, FPAD), jnp.float32).at[0, :F].set(p["conv_b"])

    # aux heads packed row-wise: tt(4), sn, sr, sa, rot, noi, aff(4) -> 13 rows
    aux_w = jnp.concatenate([p["tt_w"], p["sn_w"], p["sr_w"], p["sa_w"],
                             p["rot_w"], p["noi_w"], p["aff_w"]], axis=0)
    aux_b = jnp.concatenate([p["tt_b"], p["sn_b"], p["sr_b"], p["sa_b"],
                             p["rot_b"], p["noi_b"], p["aff_b"]], axis=0)

    wh = jnp.zeros((FPAD, ncpad + AUXPAD), jnp.float32)
    wh = wh.at[:F, :num_classes].set(p["fc_w"].T)
    wh = wh.at[:F, ncpad:ncpad + N_AUX].set(aux_w.T)
    wh = wh.astype(jnp.bfloat16)                               # (128, ncpad+128) bf16

    bh = jnp.zeros((1, ncpad + AUXPAD), jnp.float32)
    bh = bh.at[0, :num_classes].set(p["fc_b"])
    bh = bh.at[0, ncpad:ncpad + N_AUX].set(aux_b)

    sig = np.zeros(AUXPAD, np.float32)
    tnh = np.zeros(AUXPAD, np.float32)
    lin = np.zeros(AUXPAD, np.float32)
    lin[0:4] = 1.0       # transform_type_logits : identity
    sig[4:7] = 1.0       # severity_*            : sigmoid
    tnh[7] = 180.0       # rotation_angle        : tanh * 180
    sig[8] = 0.5         # noise_std             : sigmoid * 0.5
    tnh[9:11] = 0.1      # translate_x / _y      : tanh * 0.1
    tnh[11:13] = 15.0    # shear_x / _y          : tanh * 15

    return dict(wc=wc, bc=bc, wh=wh, bh=bh,
                sig_scale=jnp.asarray(sig).reshape(1, AUXPAD),
                tanh_scale=jnp.asarray(tnh).reshape(1, AUXPAD),
                lin_scale=jnp.asarray(lin).reshape(1, AUXPAD))


# ------------------------------ pure-f32 reference ---------------------------

def reference_forward(p, x, *, num_classes=200):
    """True float32 forward from raw PyTorch-layout params (no bf16 routing)."""
    F = p["conv_w"].shape[0]
    cols = _im2col_nhwc(x)                                      # f32
    wc = p["conv_w"].reshape(F, -1).T                           # (C*9, F)
    conv = jnp.einsum("bmk,kf->bmf", cols, wc, precision="highest") + p["conv_b"]
    conv = jnp.maximum(conv, 0.0)
    feat = jnp.mean(conv, axis=1)                               # (B, F)

    def head(w, b):
        return jnp.dot(feat, w.T, precision="highest") + b

    logits = head(p["fc_w"], p["fc_b"])
    aff = head(p["aff_w"], p["aff_b"])
    aux = {
        "transform_type_logits": head(p["tt_w"], p["tt_b"]),
        "severity_noise": jax.nn.sigmoid(head(p["sn_w"], p["sn_b"])),
        "severity_rotation": jax.nn.sigmoid(head(p["sr_w"], p["sr_b"])),
        "severity_affine": jax.nn.sigmoid(head(p["sa_w"], p["sa_b"])),
        "rotation_angle": jnp.tanh(head(p["rot_w"], p["rot_b"])) * 180.0,
        "noise_std": jax.nn.sigmoid(head(p["noi_w"], p["noi_b"])) * 0.5,
        "translate_x": jnp.tanh(aff[:, 0:1]) * 0.1,
        "translate_y": jnp.tanh(aff[:, 1:2]) * 0.1,
        "shear_x": jnp.tanh(aff[:, 2:3]) * 15.0,
        "shear_y": jnp.tanh(aff[:, 3:4]) * 15.0,
    }
    return logits, aux


# ------------------------------ main ------------------------------------------

if __name__ == "__main__":
    key = jax.random.PRNGKey(0)
    kx, kp = jax.random.split(key)

    B, C, H, W = 2, 4, 16, 16
    num_classes = 200
    x = jax.random.normal(kx, (B, C, H, W), jnp.float32)        # NCHW like PyTorch
    raw_params = init_params(kp, c_in=C, feature_dim=32, num_classes=num_classes)
    packed = pack_params(raw_params, num_classes=num_classes)   # hoisted, once

    fwd = jax.jit(functools.partial(flexible_blended_ttt_forward,
                                    num_classes=num_classes))
    logits, aux = fwd(packed, x)
    logits, aux = jax.block_until_ready((logits, aux))

    assert logits.shape == (B, num_classes) and logits.dtype == jnp.float32
    assert aux["transform_type_logits"].shape == (B, 4)
    for k in ("severity_noise", "severity_rotation", "severity_affine",
              "rotation_angle", "noise_std", "translate_x", "translate_y",
              "shear_x", "shear_y"):
        assert aux[k].shape == (B, 1), (k, aux[k].shape)
    assert bool(jnp.all(jnp.isfinite(logits)))

    # Validate against a true f32 reference (bf16 rounding absorbed by tolerances).
    ref_logits, ref_aux = reference_forward(raw_params, x, num_classes=num_classes)
    assert bool(jnp.allclose(logits, ref_logits, atol=5e-2, rtol=5e-2))
    for k in aux:
        assert bool(jnp.allclose(aux[k], ref_aux[k], atol=5e-2, rtol=5e-2)), k

    print("KERNEL_OK")
</pallas_src>

<mosaic_0001>
module attributes {stable_mosaic.version = 11 : i64} {
  func.func @kernel(%arg0: i32, %arg1: i32, %arg2: memref<1x1x2048x36xbf16, #tpu.memory_space<vmem>>, %arg3: memref<36x128xbf16, #tpu.memory_space<vmem>>, %arg4: memref<1x128xf32, #tpu.memory_space<vmem>>, %arg5: memref<128x384xbf16, #tpu.memory_space<vmem>>, %arg6: memref<1x384xf32, #tpu.memory_space<vmem>>, %arg7: memref<1x128xf32, #tpu.memory_space<vmem>>, %arg8: memref<1x128xf32, #tpu.memory_space<vmem>>, %arg9: memref<1x128xf32, #tpu.memory_space<vmem>>, %arg10: memref<8x256xf32, #tpu.memory_space<vmem>>, %arg11: memref<8x128xf32, #tpu.memory_space<vmem>>) attributes {dimension_semantics = [#tpu.dimension_semantics<parallel>, #tpu.dimension_semantics<arbitrary>], iteration_bounds = array<i64: 1, 1>, scalar_prefetch = 0 : i64, scratch_operands = 0 : i64, tpu.core_type = #tpu.core_type<tc>, window_params = [{transform_indices = @transform_0, window_bounds = array<i64: 1, 1, 2048, 36>}, {pipeline_mode = #tpu.pipeline_mode<synchronous>, transform_indices = @transform_1, window_bounds = array<i64: 36, 128>}, {pipeline_mode = #tpu.pipeline_mode<synchronous>, transform_indices = @transform_2, window_bounds = array<i64: 1, 128>}, {pipeline_mode = #tpu.pipeline_mode<synchronous>, transform_indices = @transform_3, window_bounds = array<i64: 128, 384>}, {pipeline_mode = #tpu.pipeline_mode<synchronous>, transform_indices = @transform_4, window_bounds = array<i64: 1, 384>}, {pipeline_mode = #tpu.pipeline_mode<synchronous>, transform_indices = @transform_5, window_bounds = array<i64: 1, 128>}, {pipeline_mode = #tpu.pipeline_mode<synchronous>, transform_indices = @transform_6, window_bounds = array<i64: 1, 128>}, {pipeline_mode = #tpu.pipeline_mode<synchronous>, transform_indices = @transform_7, window_bounds = array<i64: 1, 128>}, {transform_indices = @transform_8, window_bounds = array<i64: 8, 256>}, {transform_indices = @transform_9, window_bounds = array<i64: 8, 128>}]} {
    %c0 = arith.constant 0 : index
    %c0_0 = arith.constant 0 : index
    %c0_1 = arith.constant 0 : index
    %c0_2 = arith.constant 0 : index
    %0 = vector.load %arg2[%c0, %c0_0, %c0_1, %c0_2] : memref<1x1x2048x36xbf16, #tpu.memory_space<vmem>>, vector<1x1x2048x36xbf16>
    %1 = vector.shape_cast %0 : vector<1x1x2048x36xbf16> to vector<2048x36xbf16>
    %c0_3 = arith.constant 0 : index
    %c0_4 = arith.constant 0 : index
    %2 = vector.load %arg3[%c0_3, %c0_4] : memref<36x128xbf16, #tpu.memory_space<vmem>>, vector<36x128xbf16>
    %c0_5 = arith.constant 0 : index
    %c0_6 = arith.constant 0 : index
    %3 = vector.load %arg4[%c0_5, %c0_6] : memref<1x128xf32, #tpu.memory_space<vmem>>, vector<1x128xf32>
    %cst = arith.constant dense<0.000000e+00> : vector<2048x128xf32>
    %4 = tpu.matmul %1, %2, %cst {dimension_numbers = #tpu.dot_dimension_numbers<[1], [0], [0], [1], [0, 0, 1, 1], [], []>} : vector<2048x36xbf16>, vector<36x128xbf16>, vector<2048x128xf32> -> vector<2048x128xf32>
    %5 = vector.broadcast %3 : vector<1x128xf32> to vector<2048x128xf32>
    %6 = arith.addf %4, %5 : vector<2048x128xf32>
    %cst_7 = arith.constant 0.000000e+00 : f32
    %7 = vector.broadcast %cst_7 : f32 to vector<2048x128xf32>
    %8 = arith.maximumf %6, %7 : vector<2048x128xf32>
    %9 = vector.extract_strided_slice %8 {offsets = [0, 0], sizes = [256, 128], strides = [1, 1]} : vector<2048x128xf32> to vector<256x128xf32>
    %cst_8 = arith.constant dense<0.000000e+00> : vector<128xf32>
    %10 = vector.multi_reduction <add>, %9, %cst_8 [0] : vector<256x128xf32> to vector<128xf32>
    %11 = vector.shape_cast %10 : vector<128xf32> to vector<1x128xf32>
    %12 = vector.extract_strided_slice %8 {offsets = [256, 0], sizes = [256, 128], strides = [1, 1]} : vector<2048x128xf32> to vector<256x128xf32>
    %cst_9 = arith.constant dense<0.000000e+00> : vector<128xf32>
    %13 = vector.multi_reduction <add>, %12, %cst_9 [0] : vector<256x128xf32> to vector<128xf32>
    %14 = vector.shape_cast %13 : vector<128xf32> to vector<1x128xf32>
    %15 = vector.extract_strided_slice %8 {offsets = [512, 0], sizes = [256, 128], strides = [1, 1]} : vector<2048x128xf32> to vector<256x128xf32>
    %cst_10 = arith.constant dense<0.000000e+00> : vector<128xf32>
    %16 = vector.multi_reduction <add>, %15, %cst_10 [0] : vector<256x128xf32> to vector<128xf32>
    %17 = vector.shape_cast %16 : vector<128xf32> to vector<1x128xf32>
    %18 = vector.extract_strided_slice %8 {offsets = [768, 0], sizes = [256, 128], strides = [1, 1]} : vector<2048x128xf32> to vector<256x128xf32>
    %cst_11 = arith.constant dense<0.000000e+00> : vector<128xf32>
    %19 = vector.multi_reduction <add>, %18, %cst_11 [0] : vector<256x128xf32> to vector<128xf32>
    %20 = vector.shape_cast %19 : vector<128xf32> to vector<1x128xf32>
    %21 = vector.extract_strided_slice %8 {offsets = [1024, 0], sizes = [256, 128], strides = [1, 1]} : vector<2048x128xf32> to vector<256x128xf32>
    %cst_12 = arith.constant dense<0.000000e+00> : vector<128xf32>
    %22 = vector.multi_reduction <add>, %21, %cst_12 [0] : vector<256x128xf32> to vector<128xf32>
    %23 = vector.shape_cast %22 : vector<128xf32> to vector<1x128xf32>
    %24 = vector.extract_strided_slice %8 {offsets = [1280, 0], sizes = [256, 128], strides = [1, 1]} : vector<2048x128xf32> to vector<256x128xf32>
    %cst_13 = arith.constant dense<0.000000e+00> : vector<128xf32>
    %25 = vector.multi_reduction <add>, %24, %cst_13 [0] : vector<256x128xf32> to vector<128xf32>
    %26 = vector.shape_cast %25 : vector<128xf32> to vector<1x128xf32>
    %27 = vector.extract_strided_slice %8 {offsets = [1536, 0], sizes = [256, 128], strides = [1, 1]} : vector<2048x128xf32> to vector<256x128xf32>
    %cst_14 = arith.constant dense<0.000000e+00> : vector<128xf32>
    %28 = vector.multi_reduction <add>, %27, %cst_14 [0] : vector<256x128xf32> to vector<128xf32>
    %29 = vector.shape_cast %28 : vector<128xf32> to vector<1x128xf32>
    %30 = vector.extract_strided_slice %8 {offsets = [1792, 0], sizes = [256, 128], strides = [1, 1]} : vector<2048x128xf32> to vector<256x128xf32>
    %cst_15 = arith.constant dense<0.000000e+00> : vector<128xf32>
    %31 = vector.multi_reduction <add>, %30, %cst_15 [0] : vector<256x128xf32> to vector<128xf32>
    %32 = vector.shape_cast %31 : vector<128xf32> to vector<1x128xf32>
    %33 = tpu.concatenate %11, %14, %17, %20, %23, %26, %29, %32 in 0 : vector<1x128xf32>, vector<1x128xf32>, vector<1x128xf32>, vector<1x128xf32>, vector<1x128xf32>, vector<1x128xf32>, vector<1x128xf32>, vector<1x128xf32> -> vector<8x128xf32>
    %c0_16 = arith.constant 0 : index
    %c0_17 = arith.constant 0 : index
    %34 = vector.load %arg5[%c0_16, %c0_17] : memref<128x384xbf16, #tpu.memory_space<vmem>>, vector<128x384xbf16>
    %c0_18 = arith.constant 0 : index
    %c0_19 = arith.constant 0 : index
    %35 = vector.load %arg6[%c0_18, %c0_19] : memref<1x384xf32, #tpu.memory_space<vmem>>, vector<1x384xf32>
    %c0_20 = arith.constant 0 : index
    %c0_21 = arith.constant 0 : index
    %36 = vector.load %arg7[%c0_20, %c0_21] : memref<1x128xf32, #tpu.memory_space<vmem>>, vector<1x128xf32>
    %c0_22 = arith.constant 0 : index
    %c0_23 = arith.constant 0 : index
    %37 = vector.load %arg8[%c0_22, %c0_23] : memref<1x128xf32, #tpu.memory_space<vmem>>, vector<1x128xf32>
    %c0_24 = arith.constant 0 : index
    %c0_25 = arith.constant 0 : index
    %38 = vector.load %arg9[%c0_24, %c0_25] : memref<1x128xf32, #tpu.memory_space<vmem>>, vector<1x128xf32>
    %cst_26 = arith.constant 3.906250e-03 : f32
    %39 = vector.broadcast %cst_26 : f32 to vector<8x128xf32>
    %40 = arith.mulf %33, %39 : vector<8x128xf32>
    %41 = arith.truncf %40 : vector<8x128xf32> to vector<8x128xbf16>
    %cst_27 = arith.constant dense<0.000000e+00> : vector<8x384xf32>
    %42 = tpu.matmul %41, %34, %cst_27 {dimension_numbers = #tpu.dot_dimension_numbers<[1], [0], [0], [1], [0, 0, 1, 1], [], []>} : vector<8x128xbf16>, vector<128x384xbf16>, vector<8x384xf32> -> vector<8x384xf32>
    %43 = vector.broadcast %35 : vector<1x384xf32> to vector<8x384xf32>
    %44 = arith.addf %42, %43 : vector<8x384xf32>
    %45 = vector.extract_strided_slice %44 {offsets = [0, 0], sizes = [8, 256], strides = [1, 1]} : vector<8x384xf32> to vector<8x256xf32>
    %c0_28 = arith.constant 0 : index
    %c0_29 = arith.constant 0 : index
    %46 = vector.load %arg10[%c0_28, %c0_29] : memref<8x256xf32, #tpu.memory_space<vmem>>, vector<8x256xf32>
    tpu.vector_store %arg10[%c0_28, %c0_29], %45 {strides = array<i32>} : memref<8x256xf32, #tpu.memory_space<vmem>>, vector<8x256xf32>,
    %47 = vector.extract_strided_slice %44 {offsets = [0, 256], sizes = [8, 128], strides = [1, 1]} : vector<8x384xf32> to vector<8x128xf32>
    %48 = arith.negf %47 : vector<8x128xf32>
    %49 = math.exp %48 : vector<8x128xf32>
    %cst_30 = arith.constant 1.000000e+00 : f32
    %50 = vector.broadcast %cst_30 : f32 to vector<8x128xf32>
    %51 = arith.addf %50, %49 : vector<8x128xf32>
    %52 = arith.divf %50, %51 : vector<8x128xf32>
    %53 = vector.broadcast %36 : vector<1x128xf32> to vector<8x128xf32>
    %54 = arith.mulf %53, %52 : vector<8x128xf32>
    %55 = math.tanh %47 : vector<8x128xf32>
    %56 = vector.broadcast %37 : vector<1x128xf32> to vector<8x128xf32>
    %57 = arith.mulf %56, %55 : vector<8x128xf32>
    %58 = arith.addf %54, %57 : vector<8x128xf32>
    %59 = vector.broadcast %38 : vector<1x128xf32> to vector<8x128xf32>
    %60 = arith.mulf %59, %47 : vector<8x128xf32>
    %61 = arith.addf %58, %60 : vector<8x128xf32>
    %c0_31 = arith.constant 0 : index
    %c0_32 = arith.constant 0 : index
    %62 = vector.load %arg11[%c0_31, %c0_32] : memref<8x128xf32, #tpu.memory_space<vmem>>, vector<8x128xf32>
    tpu.vector_store %arg11[%c0_31, %c0_32], %61 {strides = array<i32>} : memref<8x128xf32, #tpu.memory_space<vmem>>, vector<8x128xf32>,
    return
  }
  func.func @transform_0(%arg0: i32, %arg1: i32) -> (i32, i32, i32, i32) {
    %c0_i32 = arith.constant 0 : i32
    %c0_i32_0 = arith.constant 0 : i32
    %c0_i32_1 = arith.constant 0 : i32
    return %arg0, %arg1, %c0_i32, %c0_i32_0 : i32, i32, i32, i32
  }
  func.func @transform_1(%arg0: i32, %arg1: i32) -> (i32, i32) {
    %c0_i32 = arith.constant 0 : i32
    %c0_i32_0 = arith.constant 0 : i32
    %c0_i32_1 = arith.constant 0 : i32
    return %c0_i32, %c0_i32_0 : i32, i32
  }
  func.func @transform_2(%arg0: i32, %arg1: i32) -> (i32, i32) {
    %c0_i32 = arith.constant 0 : i32
    %c0_i32_0 = arith.constant 0 : i32
    %c0_i32_1 = arith.constant 0 : i32
    return %c0_i32, %c0_i32_0 : i32, i32
  }
  func.func @transform_3(%arg0: i32, %arg1: i32) -> (i32, i32) {
    %c0_i32 = arith.constant 0 : i32
    %c0_i32_0 = arith.constant 0 : i32
    %c0_i32_1 = arith.constant 0 : i32
    return %c0_i32, %c0_i32_0 : i32, i32
  }
  func.func @transform_4(%arg0: i32, %arg1: i32) -> (i32, i32) {
    %c0_i32 = arith.constant 0 : i32
    %c0_i32_0 = arith.constant 0 : i32
    %c0_i32_1 = arith.constant 0 : i32
    return %c0_i32, %c0_i32_0 : i32, i32
  }
  func.func @transform_5(%arg0: i32, %arg1: i32) -> (i32, i32) {
    %c0_i32 = arith.constant 0 : i32
    %c0_i32_0 = arith.constant 0 : i32
    %c0_i32_1 = arith.constant 0 : i32
    return %c0_i32, %c0_i32_0 : i32, i32
  }
  func.func @transform_6(%arg0: i32, %arg1: i32) -> (i32, i32) {
    %c0_i32 = arith.constant 0 : i32
    %c0_i32_0 = arith.constant 0 : i32
    %c0_i32_1 = arith.constant 0 : i32
    return %c0_i32, %c0_i32_0 : i32, i32
  }
  func.func @transform_7(%arg0: i32, %arg1: i32) -> (i32, i32) {
    %c0_i32 = arith.constant 0 : i32
    %c0_i32_0 = arith.constant 0 : i32
    %c0_i32_1 = arith.constant 0 : i32
    return %c0_i32, %c0_i32_0 : i32, i32
  }
  func.func @transform_8(%arg0: i32, %arg1: i32) -> (i32, i32) {
    %c0_i32 = arith.constant 0 : i32
    %c0_i32_0 = arith.constant 0 : i32
    return %arg0, %c0_i32 : i32, i32
  }
  func.func @transform_9(%arg0: i32, %arg1: i32) -> (i32, i32) {
    %c0_i32 = arith.constant 0 : i32
    %c0_i32_0 = arith.constant 0 : i32
    return %arg0, %c0_i32 : i32, i32
  }
}

</mosaic_0001>

<bundles_post_ra>
// kernel: flexible_blended_ttt_forward.1
= control target key start
LH: loop header
LB: loop body
LE: loop exit
PB: predicated region body
PF: predicated region fallthrough
CT: control target
= control target key end

     0   :  { %vm955_vm0 = vcmask 293888   ;;  %vm1340_vm1 = vcmask 1041408   ;;  %vm2953_vm2 = vcmask 1040384   ;;  %vm2956_vm3 = vcmask 1042432   ;;  %s5199_s1 = inlined_call_operand.vmem [shape: bf16[36,128], index: 1, kind: input, shape index: {}]   ;;  %s5200_s0 = inlined_call_operand.vmem [shape: bf16[1,1,2048,36], index: 0, kind: input, shape index: {}]   ;;  %s5201_s3 = inlined_call_operand.vmem [shape: bf16[128,384], index: 3, kind: input, shape index: {}]   ;;  %s5202_s2 = inlined_call_operand.vmem [shape: f32[1,128], index: 2, kind: input, shape index: {}]   ;;  %s5203_s4 = inlined_call_operand.vmem [shape: f32[1,384], index: 4, kind: input, shape index: {}]   ;;  %s5204_s8 = inlined_call_operand.vmem [shape: f32[8,256], index: 8, kind: output, shape index: {0}]   ;;  %s5205_s5 = inlined_call_operand.vmem [shape: f32[1,128], index: 5, kind: input, shape index: {}]   ;;  %s5206_s6 = inlined_call_operand.vmem [shape: f32[1,128], index: 6, kind: input, shape index: {}]   ;;  %s5207_s7 = inlined_call_operand.vmem [shape: f32[1,128], index: 7, kind: input, shape index: {}]   ;;  %s5208_s9 = inlined_call_operand.vmem [shape: f32[8,128], index: 9, kind: output, shape index: {1}]  }
   0x1   :  { %v3991_v0 = vld [vmem:[%s5199_s1] sm:$0xff]   ;;  %v3992_v1 = vld [vmem:[%s5199_s1 + $0x8] sm:$0xff]   ;;  %v3993_v2 = vld [vmem:[%s5199_s1 + $0x10] ss:$0 sps:$4 sm:$0x33]   ;;  %vm2958_vm4 = vcmask 1043456  }
   0x2   :  { %3698 = vmatprep.subr.bf16.mxu0 %v3991_v0  ;;  %v3994_v3 = vld [vmem:[%s5200_s0] sm:$0xff]   ;;  %3980 = vmatprep.subr.bf16.mxu1 %v3991_v0  ;;  %v1342_v4 = vsel %vm1340_vm1, %v3993_v2, 0  ;;  %v3995_v5 = vld [vmem:[%s5200_s0 + $0x8] sm:$0xff]   ;;  %v3996_v6 = vld [vmem:[%s5200_s0 + $0x10] sm:$0xff]   ;;  %vm2960_vm5 = vcmask 1044480   ;;  %vm2962_vm6 = vcmask 1045504  }
   0x3   :  { %3699 = vmatpush3.bf16.msra.mxu0 %v3991_v0  ;;  %3983 = vmatpush3.bf16.msra.mxu1 %v3991_v0  ;;  %v3997_v7 = vld [vmem:[%s5200_s0 + $0x18] sm:$0xff]   ;;  %v3998_v8 = vld [vmem:[%s5200_s0 + $0x20] sm:$0xff]   ;;  %v4014_v9 = vld [vmem:[%s5200_s0 + $0x230] sm:$0xff]   ;;  %vm2964_vm7 = vcmask 1046528   ;;  %vm4164_vm8 = vmmov 0  }
   0x4   :  { %3700 = vmatprep.subr.bf16.mxu0 %v3992_v1  ;;  %3704 = vmatprep.mubr.msk.bf16.mxu0 %vm955_vm0, %v3994_v3  ;;  %v4015_v10 = vld [vmem:[%s5200_s0 + $0x238] sm:$0xff]   ;;  %v3999_v11 = vld [vmem:[%s5200_s0 + $0x28] sm:$0xff]   ;;  %v4000_v12 = vld [vmem:[%s5200_s0 + $0x30] sm:$0xff]  }
   0x5   :  { %3981 = vmatprep.subr.bf16.mxu1 %v3992_v1  ;;  %3844 = vmatprep.mubr.msk.bf16.mxu1 %vm955_vm0, %v4014_v9  ;;  %v4018_v13 = vld [vmem:[%s5200_s0 + $0x240] sm:$0xff]   ;;  %v4019_v14 = vld [vmem:[%s5200_s0 + $0x248] sm:$0xff]   ;;  %v4022_v15 = vld [vmem:[%s5200_s0 + $0x250] sm:$0xff]  }
   0x6   :  { %v4001_v16 = vld [vmem:[%s5200_s0 + $0x38] sm:$0xff]   ;;  %v4002_v17 = vld [vmem:[%s5200_s0 + $0x40] sm:$0xff]   ;;  %v4003_v20 = vld [vmem:[%s5200_s0 + $0x48] sm:$0xff]  }
   0x7   :  { %3701 = vmatpush3.bf16.msra.mxu0 %v3992_v1  ;;  %3984 = vmatpush3.bf16.msra.mxu1 %v3992_v1  ;;  %v4023_v18 = vld [vmem:[%s5200_s0 + $0x258] sm:$0xff]   ;;  %v4026_v19 = vld [vmem:[%s5200_s0 + $0x260] sm:$0xff]   ;;  %v4004_v21 = vld [vmem:[%s5200_s0 + $0x50] sm:$0xff]  }
   0x8   :  { %3986 = vmatprep.subr.msk.bf16.mxu0 %vm1340_vm1, %v3993_v2  ;;  %3987 = vmatprep.subr.msk.bf16.mxu1 %vm1340_vm1, %v3993_v2  ;;  %v4027_v22 = vld [vmem:[%s5200_s0 + $0x268] sm:$0xff]   ;;  %v4030_v23 = vld [vmem:[%s5200_s0 + $0x270] sm:$0xff]   ;;  %v4005_v24 = vld [vmem:[%s5200_s0 + $0x58] sm:$0xff]  }
   0x9   :  { %v4006_v25 = vld [vmem:[%s5200_s0 + $0x60] sm:$0xff]   ;;  %v4031_v26 = vld [vmem:[%s5200_s0 + $0x278] sm:$0xff]   ;;  %v4007_v28 = vld [vmem:[%s5200_s0 + $0x68] sm:$0xff]  }
   0xa   :  { %v4034_v27 = vld [vmem:[%s5200_s0 + $0x280] sm:$0xff]   ;;  %v4008_v29 = vld [vmem:[%s5200_s0 + $0x70] sm:$0xff]   ;;  %v4035_v30 = vld [vmem:[%s5200_s0 + $0x288] sm:$0xff]  }
   0xb   :  { %3703 = vmatpush3.bf16.msra.mxu0 %v1342_v4  ;;  %3985 = vmatpush3.bf16.msra.mxu1 %v1342_v4  ;;  %v4038_v31 = vld [vmem:[%s5200_s0 + $0x290] sm:$0xff]   ;;  %v4009_v32 = vld [vmem:[%s5200_s0 + $0x78] sm:$0xff]   ;;  %v4010_v33 = vld [vmem:[%s5200_s0 + $0x80] sm:$0xff]  }
   0xc   :  { %v4039_v34 = vld [vmem:[%s5200_s0 + $0x298] sm:$0xff]   ;;  %v4042_v35 = vld [vmem:[%s5200_s0 + $0x2a0] sm:$0xff]   ;;  %v4011_v36 = vld [vmem:[%s5200_s0 + $0x88] sm:$0xff]  }
   0xd   :  { %v4012_v37 = vld [vmem:[%s5200_s0 + $0x90] sm:$0xff]   ;;  %v4043_v38 = vld [vmem:[%s5200_s0 + $0x2a8] sm:$0xff]   ;;  %v4013_v40 = vld [vmem:[%s5200_s0 + $0x98] sm:$0xff]  }
   0xe   :  { %3705 = vmatmul.mubr.msk.bf16.vlgmr.msra.gmra.mrb[0].mxu0 %vm955_vm0, %v3995_v5  ;;  %3845 = vmatmul.mubr.msk.bf16.vlgmr.msra.gmra.mrb[0].mxu1 %vm955_vm0, %v4015_v10  ;;  %v4046_v39 = vld [vmem:[%s5200_s0 + $0x2b0] sm:$0xff]   ;;  %v4016_v41 = vld [vmem:[%s5200_s0 + $0xa0] sm:$0xff]   ;;  %v4047_v42 = vld [vmem:[%s5200_s0 + $0x2b8] sm:$0xff]  }
   0xf   :  { %3708 = vmatprep.mubr.msk.bf16.mxu0 %vm955_vm0, %v3996_v6  ;;  %3848 = vmatprep.mubr.msk.bf16.mxu1 %vm955_vm0, %v4018_v13  ;;  %v4050_v43 = vld [vmem:[%s5200_s0 + $0x2c0] sm:$0xff]   ;;  %v4017_v44 = vld [vmem:[%s5200_s0 + $0xa8] sm:$0xff]   ;;  %v4020_v45 = vld [vmem:[%s5200_s0 + $0xb0] sm:$0xff]  }
  0x10   :  { %v4051_v46 = vld [vmem:[%s5200_s0 + $0x2c8] sm:$0xff]   ;;  %v4054_v47 = vld [vmem:[%s5200_s0 + $0x2d0] sm:$0xff]   ;;  %v4021_v48 = vld [vmem:[%s5200_s0 + $0xb8] sm:$0xff]  }
  0x11   :  { %v4024_v49 = vld [vmem:[%s5200_s0 + $0xc0] sm:$0xff]   ;;  %v4055_v50 = vld [vmem:[%s5200_s0 + $0x2d8] sm:$0xff]   ;;  %v4025_v52 = vld [vmem:[%s5200_s0 + $0xc8] sm:$0xff]  }
  0x12   :  { %v4058_v51 = vld [vmem:[%s5200_s0 + $0x2e0] sm:$0xff]   ;;  %v4028_v53 = vld [vmem:[%s5200_s0 + $0xd0] sm:$0xff]   ;;  %v4059_v54 = vld [vmem:[%s5200_s0 + $0x2e8] sm:$0xff]  }
  0x13   :  { %v4062_v55 = vld [vmem:[%s5200_s0 + $0x2f0] sm:$0xff]   ;;  %v4029_v56 = vld [vmem:[%s5200_s0 + $0xd8] sm:$0xff]   ;;  %v4032_v57 = vld [vmem:[%s5200_s0 + $0xe0] sm:$0xff]  }
  0x14   :  { %v4063_v58 = vld [vmem:[%s5200_s0 + $0x2f8] sm:$0xff]   ;;  %v4066_v59 = vld [vmem:[%s5200_s0 + $0x300] sm:$0xff]   ;;  %v4033_v60 = vld [vmem:[%s5200_s0 + $0xe8] sm:$0xff]  }
  0x15   :  { %v4036_v61 = vld [vmem:[%s5200_s0 + $0xf0] sm:$0xff]   ;;  %v4067_v62 = vld [vmem:[%s5200_s0 + $0x308] sm:$0xff]   ;;  %v4037_v0 = vld [vmem:[%s5200_s0 + $0xf8] sm:$0xff]  }
  0x16   :  { %3709 = vmatmul.mubr.msk.bf16.gmra.mrb[4].mxu0 %vm955_vm0, %v3997_v7  ;;  %3849 = vmatmul.mubr.msk.bf16.gmra.mrb[4].mxu1 %vm955_vm0, %v4019_v14  ;;  %v4070_v63 = vld [vmem:[%s5200_s0 + $0x310] sm:$0xff]   ;;  %v4040_v1 = vld [vmem:[%s5200_s0 + $0x100] sm:$0xff]   ;;  %v4071_v2 = vld [vmem:[%s5200_s0 + $0x318] sm:$0xff]  }
  0x17   :  { %3712 = vmatprep.mubr.msk.bf16.mxu0 %vm955_vm0, %v3998_v8  ;;  %3852 = vmatprep.mubr.msk.bf16.mxu1 %vm955_vm0, %v4022_v15  ;;  %v4074_v3 = vld [vmem:[%s5200_s0 + $0x320] sm:$0xff]   ;;  %v4041_v4 = vld [vmem:[%s5200_s0 + $0x108] sm:$0xff]   ;;  %v4044_v5 = vld [vmem:[%s5200_s0 + $0x110] sm:$0xff]  }
  0x18   :  { %v4075_v6 = vld [vmem:[%s5200_s0 + $0x328] sm:$0xff]   ;;  %v4078_v7 = vld [vmem:[%s5200_s0 + $0x330] sm:$0xff]   ;;  %v4045_v8 = vld [vmem:[%s5200_s0 + $0x118] sm:$0xff]  }
  0x19   :  { %v4048_v9 = vld [vmem:[%s5200_s0 + $0x120] sm:$0xff]   ;;  %v4079_v10 = vld [vmem:[%s5200_s0 + $0x338] sm:$0xff]   ;;  %v4052_v13 = vld [vmem:[%s5200_s0 + $0x130] sm:$0xff]  }
  0x1a   :  { %v4083_v14 = vld [vmem:[%s5200_s0 + $0x348] sm:$0xff]   ;;  %v4086_v15 = vld [vmem:[%s5200_s0 + $0x350] sm:$0xff]  }
  0x1e   :  { %3713 = vmatmul.mubr.msk.bf16.gmra.mrb[8].mxu0 %vm955_vm0, %v3999_v11  ;;  %3853 = vmatmul.mubr.msk.bf16.gmra.mrb[8].mxu1 %vm955_vm0, %v4023_v18  ;;  %v4082_v11 = vld [vmem:[%s5200_s0 + $0x340] sm:$0xff]   ;;  %v4087_v18 = vld [vmem:[%s5200_s0 + $0x358] sm:$0xff]  }
  0x1f   :  { %3716 = vmatprep.mubr.msk.bf16.mxu0 %vm955_vm0, %v4000_v12  ;;  %3856 = vmatprep.mubr.msk.bf16.mxu1 %vm955_vm0, %v4026_v19  ;;  %v4049_v12 = vld [vmem:[%s5200_s0 + $0x128] sm:$0xff]   ;;  %v4090_v19 = vld [vmem:[%s5200_s0 + $0x360] sm:$0xff]  }
  0x26   :  { %3717 = vmatmul.mubr.msk.bf16.gmra.mrb[12].mxu0 %vm955_vm0, %v4001_v16  ;;  %3857 = vmatmul.mubr.msk.bf16.gmra.mrb[12].mxu1 %vm955_vm0, %v4027_v22  ;;  %v4053_v16 = vld [vmem:[%s5200_s0 + $0x138] sm:$0xff]   ;;  %v4091_v22 = vld [vmem:[%s5200_s0 + $0x368] sm:$0xff]  }
  0x27   :  { %3720 = vmatprep.mubr.msk.bf16.mxu0 %vm955_vm0, %v4002_v17  ;;  %3860 = vmatprep.mubr.msk.bf16.mxu1 %vm955_vm0, %v4030_v23  ;;  %v4056_v17 = vld [vmem:[%s5200_s0 + $0x140] sm:$0xff]   ;;  %v4094_v23 = vld [vmem:[%s5200_s0 + $0x370] sm:$0xff]  }
  0x2e   :  { %3721 = vmatmul.mubr.msk.bf16.gmra.mrb[16].mxu0 %vm955_vm0, %v4003_v20  ;;  %3861 = vmatmul.mubr.msk.bf16.gmra.mrb[16].mxu1 %vm955_vm0, %v4031_v26  ;;  %v4057_v20 = vld [vmem:[%s5200_s0 + $0x148] sm:$0xff]   ;;  %v4095_v26 = vld [vmem:[%s5200_s0 + $0x378] sm:$0xff]  }
  0x2f   :  { %3724 = vmatprep.mubr.msk.bf16.mxu0 %vm955_vm0, %v4004_v21  ;;  %3864 = vmatprep.mubr.msk.bf16.mxu1 %vm955_vm0, %v4034_v27  ;;  %v4060_v21 = vld [vmem:[%s5200_s0 + $0x150] sm:$0xff]   ;;  %v4098_v27 = vld [vmem:[%s5200_s0 + $0x380] sm:$0xff]  }
  0x36   :  { %3725 = vmatmul.mubr.msk.bf16.gmra.mrb[20].mxu0 %vm955_vm0, %v4005_v24  ;;  %3865 = vmatmul.mubr.msk.bf16.gmra.mrb[20].mxu1 %vm955_vm0, %v4035_v30  ;;  %v4061_v24 = vld [vmem:[%s5200_s0 + $0x158] sm:$0xff]   ;;  %v4099_v30 = vld [vmem:[%s5200_s0 + $0x388] sm:$0xff]  }
  0x37   :  { %3728 = vmatprep.mubr.msk.bf16.mxu0 %vm955_vm0, %v4006_v25  ;;  %3868 = vmatprep.mubr.msk.bf16.mxu1 %vm955_vm0, %v4038_v31  ;;  %v4064_v25 = vld [vmem:[%s5200_s0 + $0x160] sm:$0xff]   ;;  %v4102_v31 = vld [vmem:[%s5200_s0 + $0x390] sm:$0xff]  }
  0x3e   :  { %3729 = vmatmul.mubr.msk.bf16.gmra.mrb[24].mxu0 %vm955_vm0, %v4007_v28  ;;  %3869 = vmatmul.mubr.msk.bf16.gmra.mrb[24].mxu1 %vm955_vm0, %v4039_v34  ;;  %v4065_v28 = vld [vmem:[%s5200_s0 + $0x168] sm:$0xff]   ;;  %v4103_v34 = vld [vmem:[%s5200_s0 + $0x398] sm:$0xff]  }
  0x3f   :  { %3732 = vmatprep.mubr.msk.bf16.mxu0 %vm955_vm0, %v4008_v29  ;;  %3872 = vmatprep.mubr.msk.bf16.mxu1 %vm955_vm0, %v4042_v35  ;;  %v4068_v29 = vld [vmem:[%s5200_s0 + $0x170] sm:$0xff]   ;;  %v4106_v35 = vld [vmem:[%s5200_s0 + $0x3a0] sm:$0xff]  }
  0x46   :  { %3733 = vmatmul.mubr.msk.bf16.gmra.mrb[28].mxu0 %vm955_vm0, %v4009_v32  ;;  %3873 = vmatmul.mubr.msk.bf16.gmra.mrb[28].mxu1 %vm955_vm0, %v4043_v38  ;;  %v4069_v32 = vld [vmem:[%s5200_s0 + $0x178] sm:$0xff]   ;;  %v4107_v38 = vld [vmem:[%s5200_s0 + $0x3a8] sm:$0xff]  }
  0x47   :  { %3736 = vmatprep.mubr.msk.bf16.mxu0 %vm955_vm0, %v4010_v33  ;;  %3876 = vmatprep.mubr.msk.bf16.mxu1 %vm955_vm0, %v4046_v39  ;;  %v4072_v33 = vld [vmem:[%s5200_s0 + $0x180] sm:$0xff]   ;;  %v4110_v39 = vld [vmem:[%s5200_s0 + $0x3b0] sm:$0xff]  }
  0x4e   :  { %3737 = vmatmul.mubr.msk.bf16.gmra.mrb[32].mxu0 %vm955_vm0, %v4011_v36  ;;  %3877 = vmatmul.mubr.msk.bf16.gmra.mrb[32].mxu1 %vm955_vm0, %v4047_v42  ;;  %v4073_v36 = vld [vmem:[%s5200_s0 + $0x188] sm:$0xff]   ;;  %v4111_v42 = vld [vmem:[%s5200_s0 + $0x3b8] sm:$0xff]  }
  0x4f   :  { %3740 = vmatprep.mubr.msk.bf16.mxu0 %vm955_vm0, %v4012_v37  ;;  %3880 = vmatprep.mubr.msk.bf16.mxu1 %vm955_vm0, %v4050_v43  ;;  %v4076_v37 = vld [vmem:[%s5200_s0 + $0x190] sm:$0xff]   ;;  %v4114_v43 = vld [vmem:[%s5200_s0 + $0x3c0] sm:$0xff]  }
  0x56   :  { %3741 = vmatmul.mubr.msk.bf16.gmra.mrb[36].mxu0 %vm955_vm0, %v4013_v40  ;;  %3881 = vmatmul.mubr.msk.bf16.gmra.mrb[36].mxu1 %vm955_vm0, %v4051_v46  ;;  %v4077_v40 = vld [vmem:[%s5200_s0 + $0x198] sm:$0xff]   ;;  %v4084_v46 = vld [vmem:[%s5200_s0 + $0x1b0] sm:$0xff]  }
  0x57   :  { %3744 = vmatprep.mubr.msk.bf16.mxu0 %vm955_vm0, %v4016_v41  ;;  %3884 = vmatprep.mubr.msk.bf16.mxu1 %vm955_vm0, %v4054_v47  ;;  %v4080_v41 = vld [vmem:[%s5200_s0 + $0x1a0] sm:$0xff]  }
  0x58   :  { %v4124_v47 = vld [vmem:[%s5201_s3 + $0x4] ss:$12 sps:$4 sm:$0xff]  }
  0x59   :  { %3148 = vmatprep.subr.bf16.mxu1 %v4124_v47 }
  0x5e   :  { %3745 = vmatmul.mubr.msk.bf16.gmra.mrb[40].mxu0 %vm955_vm0, %v4017_v44  ;;  %3885 = vmatmul.mubr.msk.bf16.gmra.mrb[40].mxu1 %vm955_vm0, %v4055_v50  ;;  %v4081_v44 = vld [vmem:[%s5200_s0 + $0x1a8] sm:$0xff]   ;;  %v4665_v50 = vld [vmem:[%s5202_s2] ss:$0 sm:$0xff] }
  0x5f   :  { %3748 = vmatprep.mubr.msk.bf16.mxu0 %vm955_vm0, %v4020_v45  ;;  %3888 = vmatprep.mubr.msk.bf16.mxu1 %vm955_vm0, %v4058_v51  ;;  %v4122_v45 = vld [vmem:[%s5201_s3] ss:$12 sps:$4 sm:$0xff]  }
  0x60   :  { %3149 = vmatpush1.bf16.msra.mxu1 %v4122_v45 }
  0x66   :  { %3749 = vmatmul.mubr.msk.bf16.gmra.mrb[44].mxu0 %vm955_vm0, %v4021_v48  ;;  %3889 = vmatmul.mubr.msk.bf16.gmra.mrb[44].mxu1 %vm955_vm0, %v4059_v54  ;;  %v4115_v48 = vld [vmem:[%s5200_s0 + $0x3c8] sm:$0xff]  }
  0x67   :  { %3752 = vmatprep.mubr.msk.bf16.mxu0 %vm955_vm0, %v4024_v49  ;;  %3892 = vmatprep.mubr.msk.bf16.mxu1 %vm955_vm0, %v4062_v55  ;;  %v4116_v49 = vld [vmem:[%s5200_s0 + $0x3d0] sm:$0xff]  }
  0x6e   :  { %3753 = vmatmul.mubr.msk.bf16.gmra.mrb[48].mxu0 %vm955_vm0, %v4025_v52  ;;  %3893 = vmatmul.mubr.msk.bf16.gmra.mrb[48].mxu1 %vm955_vm0, %v4063_v58 }
  0x6f   :  { %3756 = vmatprep.mubr.msk.bf16.mxu0 %vm955_vm0, %v4028_v53  ;;  %3896 = vmatprep.mubr.msk.bf16.mxu1 %vm955_vm0, %v4066_v59  ;;  %v4085_v53 = vld [vmem:[%s5200_s0 + $0x1b8] sm:$0xff]  }
  0x76   :  { %3757 = vmatmul.mubr.msk.bf16.gmra.mrb[52].mxu0 %vm955_vm0, %v4029_v56  ;;  %3897 = vmatmul.mubr.msk.bf16.gmra.mrb[52].mxu1 %vm955_vm0, %v4067_v62  ;;  %v4088_v56 = vld [vmem:[%s5200_s0 + $0x1c0] sm:$0xff]  }
  0x77   :  { %3760 = vmatprep.mubr.msk.bf16.mxu0 %vm955_vm0, %v4032_v57  ;;  %3900 = vmatprep.mubr.msk.bf16.mxu1 %vm955_vm0, %v4070_v63 }
  0x7e   :  { %3761 = vmatmul.mubr.msk.bf16.gmra.mrb[56].mxu0 %vm955_vm0, %v4033_v60  ;;  %3901 = vmatmul.mubr.msk.bf16.gmra.mrb[56].mxu1 %vm955_vm0, %v4071_v2  ;;  %v4117_v60 = vld [vmem:[%s5200_s0 + $0x3d8] sm:$0xff]  }
  0x7f   :  { %3764 = vmatprep.mubr.msk.bf16.mxu0 %vm955_vm0, %v4036_v61  ;;  %3904 = vmatprep.mubr.msk.bf16.mxu1 %vm955_vm0, %v4074_v3 }
  0x86   :  { %3765 = vmatmul.mubr.msk.bf16.gmra.mrb[60].mxu0 %vm955_vm0, %v4037_v0  ;;  %3905 = vmatmul.mubr.msk.bf16.gmra.mrb[60].mxu1 %vm955_vm0, %v4075_v6  ;;  %v4118_v0 = vld [vmem:[%s5200_s0 + $0x3e0] sm:$0xff]  }
  0x87   :  { %3768 = vmatprep.mubr.msk.bf16.mxu0 %vm955_vm0, %v4040_v1  ;;  %3908 = vmatprep.mubr.msk.bf16.mxu1 %vm955_vm0, %v4078_v7 }
  0x8e   :  { %3769 = vmatmul.mubr.msk.bf16.gmra.mrb[64].mxu0 %vm955_vm0, %v4041_v4  ;;  %3909 = vmatmul.mubr.msk.bf16.gmra.mrb[64].mxu1 %vm955_vm0, %v4079_v10  ;;  %v4092_v10 = vld [vmem:[%s5200_s0 + $0x1d0] sm:$0xff]  }
  0x8f   :  { %3772 = vmatprep.mubr.msk.bf16.mxu0 %vm955_vm0, %v4044_v5  ;;  %3912 = vmatprep.mubr.msk.bf16.mxu1 %vm955_vm0, %v4082_v11  ;;  %v4089_v5 = vld [vmem:[%s5200_s0 + $0x1c8] sm:$0xff]  }
  0x96   :  { %3773 = vmatmul.mubr.msk.bf16.gmra.mrb[68].mxu0 %vm955_vm0, %v4045_v8  ;;  %3913 = vmatmul.mubr.msk.bf16.gmra.mrb[68].mxu1 %vm955_vm0, %v4083_v14 }
  0x97   :  { %3776 = vmatprep.mubr.msk.bf16.mxu0 %vm955_vm0, %v4048_v9  ;;  %3916 = vmatprep.mubr.msk.bf16.mxu1 %vm955_vm0, %v4086_v15 }
  0x9e   :  { %3777 = vmatmul.mubr.msk.bf16.gmra.mrb[72].mxu0 %vm955_vm0, %v4049_v12  ;;  %3917 = vmatmul.mubr.msk.bf16.gmra.mrb[72].mxu1 %vm955_vm0, %v4087_v18 }
  0x9f   :  { %3780 = vmatprep.mubr.msk.bf16.mxu0 %vm955_vm0, %v4052_v13  ;;  %3920 = vmatprep.mubr.msk.bf16.mxu1 %vm955_vm0, %v4090_v19 }
  0xa6   :  { %3781 = vmatmul.mubr.msk.bf16.gmra.mrb[76].mxu0 %vm955_vm0, %v4053_v16  ;;  %3921 = vmatmul.mubr.msk.bf16.gmra.mrb[76].mxu1 %vm955_vm0, %v4091_v22 }
  0xa7   :  { %3784 = vmatprep.mubr.msk.bf16.mxu0 %vm955_vm0, %v4056_v17  ;;  %3924 = vmatprep.mubr.msk.bf16.mxu1 %vm955_vm0, %v4094_v23  ;;  %v4119_v17 = vld [vmem:[%s5200_s0 + $0x3e8] sm:$0xff]   ;;  %v4120_v23 = vld [vmem:[%s5200_s0 + $0x3f0] sm:$0xff]  }
  0xae   :  { %3785 = vmatmul.mubr.msk.bf16.gmra.mrb[80].mxu0 %vm955_vm0, %v4057_v20  ;;  %3925 = vmatmul.mubr.msk.bf16.gmra.mrb[80].mxu1 %vm955_vm0, %v4095_v26 }
  0xaf   :  { %3788 = vmatprep.mubr.msk.bf16.mxu0 %vm955_vm0, %v4060_v21  ;;  %3928 = vmatprep.mubr.msk.bf16.mxu1 %vm955_vm0, %v4098_v27 }
  0xb6   :  { %3789 = vmatmul.mubr.msk.bf16.gmra.mrb[84].mxu0 %vm955_vm0, %v4061_v24  ;;  %3929 = vmatmul.mubr.msk.bf16.gmra.mrb[84].mxu1 %vm955_vm0, %v4099_v30  ;;  %v4096_v30 = vld [vmem:[%s5200_s0 + $0x1e0] sm:$0xff]  }
  0xb7   :  { %3792 = vmatprep.mubr.msk.bf16.mxu0 %vm955_vm0, %v4064_v25  ;;  %3932 = vmatprep.mubr.msk.bf16.mxu1 %vm955_vm0, %v4102_v31 }
  0xbe   :  { %3793 = vmatmul.mubr.msk.bf16.gmra.mrb[88].mxu0 %vm955_vm0, %v4065_v28  ;;  %3933 = vmatmul.mubr.msk.bf16.gmra.mrb[88].mxu1 %vm955_vm0, %v4103_v34 }
  0xbf   :  { %3796 = vmatprep.mubr.msk.bf16.mxu0 %vm955_vm0, %v4068_v29  ;;  %3936 = vmatprep.mubr.msk.bf16.mxu1 %vm955_vm0, %v4106_v35  ;;  %v4093_v29 = vld [vmem:[%s5200_s0 + $0x1d8] sm:$0xff]  }
  0xc0   :  { %v4125_v35 = vld [vmem:[%s5201_s3 + $0x18] ss:$12 sps:$4 sm:$0xff]  }
  0xc6   :  { %3797 = vmatmul.mubr.msk.bf16.gmra.mrb[92].mxu0 %vm955_vm0, %v4069_v32  ;;  %3937 = vmatmul.mubr.msk.bf16.gmra.mrb[92].mxu1 %vm955_vm0, %v4107_v38 }
  0xc7   :  { %3800 = vmatprep.mubr.msk.bf16.mxu0 %vm955_vm0, %v4072_v33  ;;  %3940 = vmatprep.mubr.msk.bf16.mxu1 %vm955_vm0, %v4110_v39 }
  0xce   :  { %3801 = vmatmul.mubr.msk.bf16.gmra.mrb[96].mxu0 %vm955_vm0, %v4073_v36  ;;  %3941 = vmatmul.mubr.msk.bf16.gmra.mrb[96].mxu1 %vm955_vm0, %v4111_v42  ;;  %v4127_v36 = vld [vmem:[%s5201_s3 + $0x1c] ss:$12 sps:$4 sm:$0xff]  }
  0xcf   :  { %3804 = vmatprep.mubr.msk.bf16.mxu0 %vm955_vm0, %v4076_v37  ;;  %3944 = vmatprep.mubr.msk.bf16.mxu1 %vm955_vm0, %v4114_v43  ;;  %v4121_v43 = vld [vmem:[%s5200_s0 + $0x3f8] sm:$0xff]  }
  0xd0   :  { %3150 = vmatprep.subr.bf16.mxu1 %v4127_v36 }
  0xd1   :  { %3151 = vmatpush1.bf16.msra.mxu1 %v4125_v35 }
  0xd6   :  { %3805 = vmatmul.mubr.msk.bf16.gmra.mrb[100].mxu0 %vm955_vm0, %v4077_v40  ;;  %3945 = vmatmul.mubr.msk.bf16.gmra.mrb[100].mxu1 %vm955_vm0, %v4115_v48 }
  0xd7   :  { %3808 = vmatprep.mubr.msk.bf16.mxu0 %vm955_vm0, %v4080_v41  ;;  %3948 = vmatprep.mubr.msk.bf16.mxu1 %vm955_vm0, %v4116_v49 }
  0xde   :  { %3809 = vmatmul.mubr.msk.bf16.gmra.mrb[104].mxu0 %vm955_vm0, %v4081_v44  ;;  %3949 = vmatmul.mubr.msk.bf16.gmra.mrb[104].mxu1 %vm955_vm0, %v4117_v60  ;;  %v4100_v60 = vld [vmem:[%s5200_s0 + $0x1f0] sm:$0xff]  }
  0xdf   :  { %3812 = vmatprep.mubr.msk.bf16.mxu0 %vm955_vm0, %v4084_v46  ;;  %3952 = vmatprep.mubr.msk.bf16.mxu1 %vm955_vm0, %v4118_v0 }
  0xe1   :  { %v3706_v51 = vpop.f32.mrb[0].mxu0  ;;  %v4699_v16 = vpop.f32.mrb[0].mxu1 }
  0xe2   :  { %v1378_v52 = vpop.f32.mrb[1].mxu0  ;;  %v1387_v58 = vadd.f32 %v3706_v51, %v4665_v50  ;;  %v4705_v18 = vpop.f32.mrb[1].mxu1 }
  0xe3   :  { %v1379_v54 = vadd.f32 %v4665_v50, %v1378_v52  ;;  %v3707_v55 = vpop.f32.mrb[2].mxu0  ;;  %v4709_v22 = vpop.f32.mrb[2].mxu1 }
  0xe4   :  { %v1381_v57 = vpop.f32.mrb[3].mxu0  ;;  %v1390_v62 = vadd.f32 %v3707_v55, %v4665_v50  ;;  %v2403_v1 = vmax.f32 %v1387_v58, 0.0  ;;  %v4714_v24 = vpop.f32.mrb[3].mxu1  ;;  %v4097_v55 = vld [vmem:[%s5200_s0 + $0x1e8] sm:$0xff]  }
  0xe5   :  { %v1382_v59 = vadd.f32 %v4665_v50, %v1381_v57  ;;  %v2401_v61 = vmax.f32 %v1379_v54, 0.0 }
  0xe6   :  { %3813 = vmatmul.mubr.msk.bf16.gmra.mrb[108].mxu0 %vm955_vm0, %v4085_v53  ;;  %v2404_v6 = vmax.f32 %v1390_v62, 0.0  ;;  %3953 = vmatmul.mubr.msk.bf16.gmra.mrb[108].mxu1 %vm955_vm0, %v4119_v17 }
  0xe7   :  { %v2402_v63 = vmax.f32 %v1382_v59, 0.0  ;;  %3816 = vmatprep.mubr.msk.bf16.mxu0 %vm955_vm0, %v4088_v56  ;;  %3956 = vmatprep.mubr.msk.bf16.mxu1 %vm955_vm0, %v4120_v23 }
  0xe9   :  { %v2657_v2 = vadd.f32 %v2402_v63, %v2401_v61  ;;  %v3710_v3 = vpop.f32.mrb[4].mxu0  ;;  %v4733_v42 = vpop.f32.mrb[4].mxu1 }
  0xea   :  { %v1394_v4 = vpop.f32.mrb[5].mxu0  ;;  %v1403_v12 = vadd.f32 %v3710_v3, %v4665_v50  ;;  %v4739_v44 = vpop.f32.mrb[5].mxu1 }
  0xeb   :  { %v2658_v7 = vadd.f32 %v2657_v2, %v2403_v1  ;;  %v1395_v8 = vadd.f32 %v4665_v50, %v1394_v4  ;;  %v3711_v9 = vpop.f32.mrb[6].mxu0  ;;  %v4743_v48 = vpop.f32.mrb[6].mxu1 }
  0xec   :  { %v1397_v11 = vpop.f32.mrb[7].mxu0  ;;  %v1406_v20 = vadd.f32 %v3711_v9, %v4665_v50  ;;  %v2407_v25 = vmax.f32 %v1403_v12, 0.0  ;;  %v4745_v49 = vpop.f32.mrb[7].mxu1 }
  0xed   :  { %v2405_v13 = vmax.f32 %v1395_v8, 0.0  ;;  %v2659_v14 = vadd.f32 %v2658_v7, %v2404_v6  ;;  %v1398_v15 = vadd.f32 %v4665_v50, %v1397_v11 }
  0xee   :  { %3817 = vmatmul.mubr.msk.bf16.gmra.mrb[112].mxu0 %vm955_vm0, %v4089_v5  ;;  %v2408_v31 = vmax.f32 %v1406_v20, 0.0  ;;  %3957 = vmatmul.mubr.msk.bf16.gmra.mrb[112].mxu1 %vm955_vm0, %v4121_v43  ;;  %v4104_v20 = vld [vmem:[%s5200_s0 + $0x200] sm:$0xff]  }
  0xef   :  { %v2660_v19 = vadd.f32 %v2659_v14, %v2405_v13  ;;  %v2406_v21 = vmax.f32 %v1398_v15, 0.0  ;;  %3820 = vmatprep.mubr.msk.bf16.mxu0 %vm955_vm0, %v4092_v10  ;;  %v4101_v13 = vld [vmem:[%s5200_s0 + $0x1f8] sm:$0xff]  }
  0xf1   :  { %v2661_v26 = vadd.f32 %v2660_v19, %v2406_v21  ;;  %v3714_v27 = vpop.f32.mrb[8].mxu0  ;;  %v4757_v2 = vpop.f32.mrb[8].mxu1 }
  0xf2   :  { %v1410_v28 = vpop.f32.mrb[9].mxu0  ;;  %v1419_v38 = vadd.f32 %v3714_v27, %v4665_v50  ;;  %v4760_v3 = vpop.f32.mrb[9].mxu1 }
  0xf3   :  { %v2662_v32 = vadd.f32 %v2661_v26, %v2407_v25  ;;  %v1411_v33 = vadd.f32 %v4665_v50, %v1410_v28  ;;  %v3715_v34 = vpop.f32.mrb[10].mxu0  ;;  %v4764_v7 = vpop.f32.mrb[10].mxu1 }
  0xf4   :  { %v1413_v37 = vpop.f32.mrb[11].mxu0  ;;  %v1422_v46 = vadd.f32 %v3715_v34, %v4665_v50  ;;  %v2411_v51 = vmax.f32 %v1419_v38, 0.0  ;;  %v4766_v8 = vpop.f32.mrb[11].mxu1 }
  0xf5   :  { %v2409_v39 = vmax.f32 %v1411_v33, 0.0  ;;  %v2663_v40 = vadd.f32 %v2662_v32, %v2408_v31  ;;  %v1414_v41 = vadd.f32 %v4665_v50, %v1413_v37 }
  0xf6   :  { %3821 = vmatmul.mubr.msk.bf16.gmra.mrb[116].mxu0 %vm955_vm0, %v4093_v29  ;;  %v2412_v56 = vmax.f32 %v1422_v46, 0.0  ;;  %v4108_v46 = vld [vmem:[%s5200_s0 + $0x210] sm:$0xff]  }
  0xf7   :  { %v2664_v45 = vadd.f32 %v2663_v40, %v2409_v39  ;;  %v2410_v47 = vmax.f32 %v1414_v41, 0.0  ;;  %3824 = vmatprep.mubr.msk.bf16.mxu0 %vm955_vm0, %v4096_v30  ;;  %v4105_v39 = vld [vmem:[%s5200_s0 + $0x208] sm:$0xff]  }
  0xf9   :  { %v2665_v52 = vadd.f32 %v2664_v45, %v2410_v47  ;;  %v3718_v53 = vpop.f32.mrb[12].mxu0  ;;  %v4777_v28 = vpop.f32.mrb[12].mxu1 }
  0xfa   :  { %v1426_v54 = vpop.f32.mrb[13].mxu0  ;;  %v1435_v62 = vadd.f32 %v3718_v53, %v4665_v50  ;;  %v4780_v29 = vpop.f32.mrb[13].mxu1 }
  0xfb   :  { %v2666_v57 = vadd.f32 %v2665_v52, %v2411_v51  ;;  %v1427_v58 = vadd.f32 %v4665_v50, %v1426_v54  ;;  %v3719_v59 = vpop.f32.mrb[14].mxu0  ;;  %v4784_v33 = vpop.f32.mrb[14].mxu1 }
  0xfc   :  { %v1429_v61 = vpop.f32.mrb[15].mxu0  ;;  %v1438_v5 = vadd.f32 %v3719_v59, %v4665_v50  ;;  %v2415_v9 = vmax.f32 %v1435_v62, 0.0  ;;  %v4786_v34 = vpop.f32.mrb[15].mxu1 }
  0xfd   :  { %v2413_v63 = vmax.f32 %v1427_v58, 0.0  ;;  %v2667_v0 = vadd.f32 %v2666_v57, %v2412_v56  ;;  %v1430_v1 = vadd.f32 %v4665_v50, %v1429_v61 }
  0xfe   :  { %3825 = vmatmul.mubr.msk.bf16.gmra.mrb[120].mxu0 %vm955_vm0, %v4097_v55  ;;  %v2416_v14 = vmax.f32 %v1438_v5, 0.0  ;;  %v4112_v5 = vld [vmem:[%s5200_s0 + $0x220] sm:$0xff]  }
  0xff   :  { %v2668_v4 = vadd.f32 %v2667_v0, %v2413_v63  ;;  %v2414_v6 = vmax.f32 %v1430_v1, 0.0  ;;  %3828 = vmatprep.mubr.msk.bf16.mxu0 %vm955_vm0, %v4100_v60 }
 0x101   :  { %v2669_v10 = vadd.f32 %v2668_v4, %v2414_v6  ;;  %v3722_v11 = vpop.f32.mrb[16].mxu0  ;;  %v4797_v55 = vpop.f32.mrb[16].mxu1  ;;  %v4109_v4 = vld [vmem:[%s5200_s0 + $0x218] sm:$0xff]  }
 0x102   :  { %v1442_v12 = vpop.f32.mrb[17].mxu0  ;;  %v1451_v23 = vadd.f32 %v3722_v11, %v4665_v50  ;;  %v4800_v56 = vpop.f32.mrb[17].mxu1 }
 0x103   :  { %v2670_v15 = vadd.f32 %v2669_v10, %v2415_v9  ;;  %v1443_v17 = vadd.f32 %v4665_v50, %v1442_v12  ;;  %v3723_v19 = vpop.f32.mrb[18].mxu0  ;;  %v4804_v60 = vpop.f32.mrb[18].mxu1  ;;  %v4128_v12 = vld [vmem:[%s5201_s3 + $0x30] ss:$12 sps:$4 sm:$0xff]  }
 0x104   :  { %v1445_v21 = vpop.f32.mrb[19].mxu0  ;;  %v1454_v31 = vadd.f32 %v3723_v19, %v4665_v50  ;;  %v2419_v35 = vmax.f32 %v1451_v23, 0.0  ;;  %v4806_v61 = vpop.f32.mrb[19].mxu1 }
 0x105   :  { %v2417_v25 = vmax.f32 %v1443_v17, 0.0  ;;  %v2671_v26 = vadd.f32 %v2670_v15, %v2416_v14  ;;  %v1446_v27 = vadd.f32 %v4665_v50, %v1445_v21 }
 0x106   :  { %3829 = vmatmul.mubr.msk.bf16.gmra.mrb[124].mxu0 %vm955_vm0, %v4101_v13  ;;  %v2420_v40 = vmax.f32 %v1454_v31, 0.0  ;;  %v4130_v13 = vld [vmem:[%s5201_s3 + $0x34] ss:$12 sps:$4 sm:$0xff]  }
 0x107   :  { %v2672_v30 = vadd.f32 %v2671_v26, %v2417_v25  ;;  %v2418_v32 = vmax.f32 %v1446_v27, 0.0  ;;  %3832 = vmatprep.mubr.msk.bf16.mxu0 %vm955_vm0, %v4104_v20  ;;  %3152 = vmatprep.subr.bf16.mxu1 %v4130_v13 }
 0x108   :  { %3153 = vmatpush1.bf16.msra.mxu1 %v4128_v12 }
 0x109   :  { %v2673_v36 = vadd.f32 %v2672_v30, %v2418_v32  ;;  %v3726_v37 = vpop.f32.mrb[20].mxu0  ;;  %v3866_v21 = vpop.f32.mrb[20].mxu1 }
 0x10a   :  { %v1458_v38 = vpop.f32.mrb[21].mxu0  ;;  %v1467_v51 = vadd.f32 %v3726_v37, %v4665_v50  ;;  %v2018_v25 = vpop.f32.mrb[21].mxu1  ;;  %v2027_v30 = vadd.f32 %v3866_v21, %v4665_v50 }
 0x10b   :  { %v2674_v41 = vadd.f32 %v2673_v36, %v2419_v35  ;;  %v1459_v43 = vadd.f32 %v4665_v50, %v1458_v38  ;;  %v3727_v45 = vpop.f32.mrb[22].mxu0  ;;  %v2019_v31 = vadd.f32 %v4665_v50, %v2018_v25  ;;  %v3867_v32 = vpop.f32.mrb[22].mxu1 }
 0x10c   :  { %v1461_v47 = vpop.f32.mrb[23].mxu0  ;;  %v1470_v58 = vadd.f32 %v3727_v45, %v4665_v50  ;;  %v2423_v62 = vmax.f32 %v1467_v51, 0.0  ;;  %v2030_v35 = vadd.f32 %v3867_v32, %v4665_v50  ;;  %v2021_v36 = vpop.f32.mrb[23].mxu1 }
 0x10d   :  { %v2421_v52 = vmax.f32 %v1459_v43, 0.0  ;;  %v2675_v53 = vadd.f32 %v2674_v41, %v2420_v40  ;;  %v1462_v54 = vadd.f32 %v4665_v50, %v1461_v47  ;;  %v2561_v40 = vmax.f32 %v2019_v31, 0.0 }
 0x10e   :  { %3833 = vmatmul.mubr.msk.bf16.gmra.mrb[128].mxu0 %vm955_vm0, %v4105_v39  ;;  %v2424_v6 = vmax.f32 %v1470_v58, 0.0  ;;  %v2022_v41 = vadd.f32 %v4665_v50, %v2021_v36 }
 0x10f   :  { %v2676_v57 = vadd.f32 %v2675_v53, %v2421_v52  ;;  %v2422_v59 = vmax.f32 %v1462_v54, 0.0  ;;  %3836 = vmatprep.mubr.msk.bf16.mxu0 %vm955_vm0, %v4108_v46  ;;  %v4113_v46 = vld [vmem:[%s5200_s0 + $0x228] sm:$0xff]   ;;  %v2563_v53 = vmax.f32 %v2027_v30, 0.0 }
 0x110   :  { %v2562_v54 = vmax.f32 %v2022_v41, 0.0 }
 0x111   :  { %v2677_v63 = vadd.f32 %v2676_v57, %v2422_v59  ;;  %v3730_v0 = vpop.f32.mrb[24].mxu0  ;;  %v2564_v59 = vmax.f32 %v2030_v35, 0.0 }
 0x112   :  { %v1474_v1 = vpop.f32.mrb[25].mxu0  ;;  %v1483_v15 = vadd.f32 %v3730_v0, %v4665_v50 }
 0x113   :  { %v2678_v9 = vadd.f32 %v2677_v63, %v2423_v62  ;;  %v1475_v10 = vadd.f32 %v4665_v50, %v1474_v1  ;;  %v3731_v11 = vpop.f32.mrb[26].mxu0  ;;  %v2842_v1 = vadd.f32 %v2562_v54, %v2561_v40 }
 0x114   :  { %v1477_v14 = vpop.f32.mrb[27].mxu0  ;;  %v1486_v23 = vadd.f32 %v3731_v11, %v4665_v50  ;;  %v2427_v37 = vmax.f32 %v1483_v15, 0.0 }
 0x115   :  { %v2425_v17 = vmax.f32 %v1475_v10, 0.0  ;;  %v2679_v19 = vadd.f32 %v2678_v9, %v2424_v6  ;;  %v1478_v20 = vadd.f32 %v4665_v50, %v1477_v14  ;;  %v2843_v12 = vadd.f32 %v2842_v1, %v2563_v53 }
 0x116   :  { %3837 = vmatmul.mubr.msk.bf16.gmra.mrb[132].mxu0 %vm955_vm0, %v4109_v4  ;;  %v2428_v43 = vmax.f32 %v1486_v23, 0.0  ;;  %v3870_v4 = vpop.f32.mrb[24].mxu1 }
 0x117   :  { %v2680_v26 = vadd.f32 %v2679_v19, %v2425_v17  ;;  %v2426_v27 = vmax.f32 %v1478_v20, 0.0  ;;  %3840 = vmatprep.mubr.msk.bf16.mxu0 %vm955_vm0, %v4112_v5  ;;  %v2043_v6 = vadd.f32 %v3870_v4, %v4665_v50  ;;  %v2034_v9 = vpop.f32.mrb[25].mxu1  ;;  %v2844_v25 = vadd.f32 %v2843_v12, %v2564_v59 }
 0x118   :  { %v2035_v13 = vadd.f32 %v4665_v50, %v2034_v9  ;;  %v3871_v14 = vpop.f32.mrb[26].mxu1 }
 0x119   :  { %v2681_v38 = vadd.f32 %v2680_v26, %v2426_v27  ;;  %v3734_v39 = vpop.f32.mrb[28].mxu0  ;;  %v2046_v17 = vadd.f32 %v3871_v14, %v4665_v50  ;;  %v2037_v19 = vpop.f32.mrb[27].mxu1  ;;  %v2567_v31 = vmax.f32 %v2043_v6, 0.0 }
 0x11a   :  { %v1490_v45 = vpop.f32.mrb[29].mxu0  ;;  %v1499_v57 = vadd.f32 %v3734_v39, %v4665_v50  ;;  %v2565_v23 = vmax.f32 %v2035_v13, 0.0  ;;  %v2038_v26 = vadd.f32 %v4665_v50, %v2037_v19 }
 0x11b   :  { %v2682_v47 = vadd.f32 %v2681_v38, %v2427_v37  ;;  %v1491_v51 = vadd.f32 %v4665_v50, %v1490_v45  ;;  %v3735_v52 = vpop.f32.mrb[30].mxu0  ;;  %v2568_v45 = vmax.f32 %v2046_v17, 0.0 }
 0x11c   :  { %v1493_v58 = vpop.f32.mrb[31].mxu0  ;;  %v1502_v5 = vadd.f32 %v3735_v52, %v4665_v50  ;;  %v2431_v15 = vmax.f32 %v1499_v57, 0.0  ;;  %v2845_v37 = vadd.f32 %v2844_v25, %v2565_v23  ;;  %v2566_v38 = vmax.f32 %v2038_v26, 0.0 }
 0x11d   :  { %v2429_v62 = vmax.f32 %v1491_v51, 0.0  ;;  %v2683_v63 = vadd.f32 %v2682_v47, %v2428_v43  ;;  %v1494_v0 = vadd.f32 %v4665_v50, %v1493_v58  ;;  %v3874_v47 = vpop.f32.mrb[28].mxu1 }
 0x11e   :  { %3841 = vmatmul.mubr.msk.bf16.gmra.mrb[136].mxu0 %vm955_vm0, %v4113_v46  ;;  %v2432_v27 = vmax.f32 %v1502_v5, 0.0  ;;  %v2846_v46 = vadd.f32 %v2845_v37, %v2566_v38  ;;  %v2050_v52 = vpop.f32.mrb[29].mxu1 }
 0x11f   :  { %v2684_v10 = vadd.f32 %v2683_v63, %v2429_v62  ;;  %v2430_v11 = vmax.f32 %v1494_v0, 0.0  ;;  %v2051_v58 = vadd.f32 %v4665_v50, %v2050_v52  ;;  %v3875_v59 = vpop.f32.mrb[30].mxu1  ;;  %v2059_v62 = vadd.f32 %v3874_v47, %v4665_v50 }
 0x120   :  { %v2847_v57 = vadd.f32 %v2846_v46, %v2567_v31  ;;  %v2053_v63 = vpop.f32.mrb[31].mxu1 }
 0x121   :  { %v2685_v20 = vadd.f32 %v2684_v10, %v2430_v11  ;;  %v3738_v21 = vpop.f32.mrb[32].mxu0  ;;  %v2569_v5 = vmax.f32 %v2051_v58, 0.0  ;;  %v2062_v10 = vadd.f32 %v3875_v59, %v4665_v50  ;;  %v2054_v11 = vadd.f32 %v4665_v50, %v2053_v63 }
 0x122   :  { %v1506_v30 = vpop.f32.mrb[33].mxu0  ;;  %v1515_v39 = vadd.f32 %v3738_v21, %v4665_v50  ;;  %v2848_v6 = vadd.f32 %v2847_v57, %v2568_v45 }
 0x123   :  { %v2686_v32 = vadd.f32 %v2685_v20, %v2431_v15  ;;  %v1507_v35 = vadd.f32 %v4665_v50, %v1506_v30  ;;  %v3739_v36 = vpop.f32.mrb[34].mxu0  ;;  %v2571_v20 = vmax.f32 %v2059_v62, 0.0  ;;  %v2570_v21 = vmax.f32 %v2054_v11, 0.0  ;;  %v3878_v30 = vpop.f32.mrb[32].mxu1 }
 0x124   :  { %v1509_v40 = vpop.f32.mrb[35].mxu0  ;;  %v1518_v51 = vadd.f32 %v3739_v36, %v4665_v50  ;;  %v2435_v0 = vmax.f32 %v1515_v39, 0.0  ;;  %v2849_v17 = vadd.f32 %v2848_v6, %v2569_v5  ;;  %v2066_v36 = vpop.f32.mrb[33].mxu1  ;;  %v2075_v45 = vadd.f32 %v3878_v30, %v4665_v50  ;;  %v4131_v5 = vld [vmem:[%s5201_s3 + $0x48] ss:$12 sps:$4 sm:$0xff]  }
 0x125   :  { %v4844_v41 = vadd.f32 %v2686_v32, %v2432_v27  ;;  %v1510_v43 = vadd.f32 %v4665_v50, %v1509_v40  ;;  %v2433_v53 = vmax.f32 %v1507_v35, 0.0  ;;  %v2572_v32 = vmax.f32 %v2062_v10, 0.0  ;;  %v3879_v40 = vpop.f32.mrb[34].mxu1  ;;  %v4133_v6 = vld [vmem:[%s5201_s3 + $0x4c] ss:$12 sps:$4 sm:$0xff]  }
 0x126   :  { %v2436_v12 = vmax.f32 %v1518_v51, 0.0  ;;  %v2850_v35 = vadd.f32 %v2849_v17, %v2570_v21  ;;  %v2067_v39 = vadd.f32 %v4665_v50, %v2066_v36  ;;  %v2069_v46 = vpop.f32.mrb[35].mxu1  ;;  %v2078_v62 = vadd.f32 %v3879_v40, %v4665_v50  ;;  %3154 = vmatprep.subr.bf16.mxu1 %v4133_v6 }
 0x127   :  { %v2434_v54 = vmax.f32 %v1510_v43, 0.0  ;;  %v2575_v10 = vmax.f32 %v2075_v45, 0.0  ;;  %3155 = vmatpush1.bf16.msra.mxu1 %v4131_v5 }
 0x128   :  { %v2851_v43 = vadd.f32 %v2850_v35, %v2571_v20 }
 0x129   :  { %v2694_v1 = vadd.f32 %v2434_v54, %v2433_v53  ;;  %v3742_v4 = vpop.f32.mrb[36].mxu0  ;;  %v2573_v53 = vmax.f32 %v2067_v39, 0.0  ;;  %v2070_v54 = vadd.f32 %v4665_v50, %v2069_v46  ;;  %v3882_v17 = vpop.f32.mrb[36].mxu1 }
 0x12a   :  { %v1522_v9 = vpop.f32.mrb[37].mxu0  ;;  %v1531_v23 = vadd.f32 %v3742_v4, %v4665_v50  ;;  %v2852_v59 = vadd.f32 %v2851_v43, %v2572_v32  ;;  %v2082_v21 = vpop.f32.mrb[37].mxu1  ;;  %v2091_v32 = vadd.f32 %v3882_v17, %v4665_v50 }
 0x12b   :  { %v2695_v13 = vadd.f32 %v2694_v1, %v2435_v0  ;;  %v1523_v14 = vadd.f32 %v4665_v50, %v1522_v9  ;;  %v3743_v15 = vpop.f32.mrb[38].mxu0  ;;  %v2574_v4 = vmax.f32 %v2070_v54, 0.0  ;;  %v3883_v30 = vpop.f32.mrb[38].mxu1 }
 0x12c   :  { %v1525_v19 = vpop.f32.mrb[39].mxu0  ;;  %v1534_v31 = vadd.f32 %v3743_v15, %v4665_v50  ;;  %v2439_v47 = vmax.f32 %v1531_v23, 0.0  ;;  %v2853_v11 = vadd.f32 %v2852_v59, %v2573_v53  ;;  %v2085_v35 = vpop.f32.mrb[39].mxu1  ;;  %v2094_v46 = vadd.f32 %v3883_v30, %v4665_v50 }
 0x12d   :  { %v2437_v25 = vmax.f32 %v1523_v14, 0.0  ;;  %v2696_v26 = vadd.f32 %v2695_v13, %v2436_v12  ;;  %v1526_v27 = vadd.f32 %v4665_v50, %v1525_v19  ;;  %v2576_v19 = vmax.f32 %v2078_v62, 0.0 }
 0x12e   :  { %v2440_v57 = vmax.f32 %v1534_v31, 0.0  ;;  %v2854_v20 = vadd.f32 %v2853_v11, %v2574_v4  ;;  %v2086_v40 = vadd.f32 %v4665_v50, %v2085_v35  ;;  %v2580_v5 = vmax.f32 %v2094_v46, 0.0 }
 0x12f   :  { %v2697_v37 = vadd.f32 %v2696_v26, %v2437_v25  ;;  %v2438_v38 = vmax.f32 %v1526_v27, 0.0  ;;  %v2083_v27 = vadd.f32 %v4665_v50, %v2082_v21 }
 0x130   :  { %v2855_v31 = vadd.f32 %v2854_v20, %v2575_v10  ;;  %v2578_v54 = vmax.f32 %v2086_v40, 0.0 }
 0x131   :  { %v2698_v51 = vadd.f32 %v2697_v37, %v2438_v38  ;;  %v3746_v52 = vpop.f32.mrb[40].mxu0  ;;  %v2577_v39 = vmax.f32 %v2083_v27, 0.0  ;;  %v3886_v4 = vpop.f32.mrb[40].mxu1 }
 0x132   :  { %v1538_v58 = vpop.f32.mrb[41].mxu0  ;;  %v1547_v12 = vadd.f32 %v3746_v52, %v4665_v50  ;;  %v2856_v45 = vadd.f32 %v2855_v31, %v2576_v19  ;;  %v2107_v17 = vadd.f32 %v3886_v4, %v4665_v50 }
 0x133   :  { %v2699_v63 = vadd.f32 %v2698_v51, %v2439_v47  ;;  %v1539_v0 = vadd.f32 %v4665_v50, %v1538_v58  ;;  %v3747_v1 = vpop.f32.mrb[42].mxu0  ;;  %v2579_v58 = vmax.f32 %v2091_v32, 0.0 }
 0x134   :  { %v1541_v9 = vpop.f32.mrb[43].mxu0  ;;  %v1550_v25 = vadd.f32 %v3747_v1, %v4665_v50  ;;  %v2443_v36 = vmax.f32 %v1547_v12, 0.0  ;;  %v2857_v59 = vadd.f32 %v2856_v45, %v2577_v39  ;;  %v2583_v40 = vmax.f32 %v2107_v17, 0.0 }
 0x135   :  { %v2441_v13 = vmax.f32 %v1539_v0, 0.0  ;;  %v2700_v14 = vadd.f32 %v2699_v63, %v2440_v57  ;;  %v1542_v15 = vadd.f32 %v4665_v50, %v1541_v9  ;;  %v2098_v9 = vpop.f32.mrb[41].mxu1 }
 0x136   :  { %v2444_v47 = vmax.f32 %v1550_v25, 0.0  ;;  %v2858_v6 = vadd.f32 %v2857_v59, %v2578_v54 }
 0x137   :  { %v2701_v23 = vadd.f32 %v2700_v14, %v2441_v13  ;;  %v2442_v26 = vmax.f32 %v1542_v15, 0.0  ;;  %v2099_v13 = vadd.f32 %v4665_v50, %v2098_v9  ;;  %v3887_v14 = vpop.f32.mrb[42].mxu1 }
 0x138   :  { %v2859_v15 = vadd.f32 %v2858_v6, %v2579_v58  ;;  %v2101_v19 = vpop.f32.mrb[43].mxu1  ;;  %v2110_v31 = vadd.f32 %v3887_v14, %v4665_v50 }
 0x139   :  { %v2702_v37 = vadd.f32 %v2701_v23, %v2442_v26  ;;  %v3750_v38 = vpop.f32.mrb[44].mxu0  ;;  %v2581_v25 = vmax.f32 %v2099_v13, 0.0  ;;  %v2102_v26 = vadd.f32 %v4665_v50, %v2101_v19 }
 0x13a   :  { %v1554_v43 = vpop.f32.mrb[45].mxu0  ;;  %v1563_v62 = vadd.f32 %v3750_v38, %v4665_v50  ;;  %v2860_v30 = vadd.f32 %v2859_v15, %v2580_v5  ;;  %v2584_v54 = vmax.f32 %v2110_v31, 0.0 }
 0x13b   :  { %v2703_v51 = vadd.f32 %v2702_v37, %v2443_v36  ;;  %v1555_v52 = vadd.f32 %v4665_v50, %v1554_v43  ;;  %v3751_v53 = vpop.f32.mrb[46].mxu0  ;;  %v2582_v38 = vmax.f32 %v2102_v26, 0.0  ;;  %v4136_v26 = vld [vmem:[%s5201_s3 + $0x64] ss:$12 sps:$4 sm:$0xff]  }
 0x13c   :  { %v1557_v57 = vpop.f32.mrb[47].mxu0  ;;  %v1566_v11 = vadd.f32 %v3751_v53, %v4665_v50  ;;  %v2447_v20 = vmax.f32 %v1563_v62, 0.0  ;;  %v2861_v43 = vadd.f32 %v2860_v30, %v2581_v25  ;;  %v4134_v25 = vld [vmem:[%s5201_s3 + $0x60] ss:$12 sps:$4 sm:$0xff]   ;;  %3156 = vmatprep.subr.bf16.mxu1 %v4136_v26 }
 0x13d   :  { %v2445_v63 = vmax.f32 %v1555_v52, 0.0  ;;  %v2704_v0 = vadd.f32 %v2703_v51, %v2444_v47  ;;  %v1558_v1 = vadd.f32 %v4665_v50, %v1557_v57  ;;  %v3890_v52 = vpop.f32.mrb[44].mxu1  ;;  %3157 = vmatpush1.bf16.msra.mxu1 %v4134_v25 }
 0x13e   :  { %v2448_v32 = vmax.f32 %v1566_v11, 0.0  ;;  %v2862_v57 = vadd.f32 %v2861_v43, %v2582_v38  ;;  %v2114_v58 = vpop.f32.mrb[45].mxu1  ;;  %v2123_v4 = vadd.f32 %v3890_v52, %v4665_v50 }
 0x13f   :  { %v2705_v10 = vadd.f32 %v2704_v0, %v2445_v63  ;;  %v2446_v12 = vmax.f32 %v1558_v1, 0.0  ;;  %v2115_v63 = vadd.f32 %v4665_v50, %v2114_v58  ;;  %v3891_v0 = vpop.f32.mrb[46].mxu1 }
 0x140   :  { %v2863_v1 = vadd.f32 %v2862_v57, %v2583_v40  ;;  %v2117_v5 = vpop.f32.mrb[47].mxu1  ;;  %v2126_v17 = vadd.f32 %v3891_v0, %v4665_v50  ;;  %v2587_v30 = vmax.f32 %v2123_v4, 0.0 }
 0x141   :  { %v2706_v21 = vadd.f32 %v2705_v10, %v2446_v12  ;;  %v3754_v23 = vpop.f32.mrb[48].mxu0  ;;  %v2585_v11 = vmax.f32 %v2115_v63, 0.0  ;;  %v2118_v12 = vadd.f32 %v4665_v50, %v2117_v5  ;;  %v3894_v38 = vpop.f32.mrb[48].mxu1 }
 0x142   :  { %v1570_v27 = vpop.f32.mrb[49].mxu0  ;;  %v1579_v45 = vadd.f32 %v3754_v23, %v4665_v50  ;;  %v2864_v15 = vadd.f32 %v2863_v1, %v2584_v54  ;;  %v2130_v43 = vpop.f32.mrb[49].mxu1  ;;  %v2139_v54 = vadd.f32 %v3894_v38, %v4665_v50 }
 0x143   :  { %v2707_v35 = vadd.f32 %v2706_v21, %v2447_v20  ;;  %v1571_v36 = vadd.f32 %v4665_v50, %v1570_v27  ;;  %v3755_v37 = vpop.f32.mrb[50].mxu0  ;;  %v2586_v23 = vmax.f32 %v2118_v12, 0.0  ;;  %v3895_v52 = vpop.f32.mrb[50].mxu1 }
 0x144   :  { %v1573_v39 = vpop.f32.mrb[51].mxu0  ;;  %v1582_v53 = vadd.f32 %v3755_v37, %v4665_v50  ;;  %v2451_v6 = vmax.f32 %v1579_v45, 0.0  ;;  %v2865_v31 = vadd.f32 %v2864_v15, %v2585_v11  ;;  %v2133_v57 = vpop.f32.mrb[51].mxu1  ;;  %v2142_v5 = vadd.f32 %v3895_v52, %v4665_v50 }
 0x145   :  { %v2449_v46 = vmax.f32 %v1571_v36, 0.0  ;;  %v2708_v47 = vadd.f32 %v2707_v35, %v2448_v32  ;;  %v1574_v51 = vadd.f32 %v4665_v50, %v1573_v39  ;;  %v2588_v39 = vmax.f32 %v2126_v17, 0.0 }
 0x146   :  { %v2452_v13 = vmax.f32 %v1582_v53, 0.0  ;;  %v2866_v40 = vadd.f32 %v2865_v31, %v2586_v23  ;;  %v2134_v0 = vadd.f32 %v4665_v50, %v2133_v57  ;;  %v2592_v26 = vmax.f32 %v2142_v5, 0.0 }
 0x147   :  { %v2709_v59 = vadd.f32 %v2708_v47, %v2449_v46  ;;  %v2450_v62 = vmax.f32 %v1574_v51, 0.0  ;;  %v2131_v51 = vadd.f32 %v4665_v50, %v2130_v43 }
 0x148   :  { %v2867_v53 = vadd.f32 %v2866_v40, %v2587_v30  ;;  %v2590_v12 = vmax.f32 %v2134_v0, 0.0  ;;  %v2688_v0 = vrot.slane %v4844_v41, 4 }
 0x149   :  { %v2710_v9 = vadd.f32 %v2709_v59, %v2450_v62  ;;  %v3758_v10 = vpop.f32.mrb[52].mxu0  ;;  %v2589_v63 = vmax.f32 %v2131_v51, 0.0  ;;  %v3898_v23 = vpop.f32.mrb[52].mxu1 }
 0x14a   :  { %v1586_v14 = vpop.f32.mrb[53].mxu0  ;;  %v1595_v32 = vadd.f32 %v3758_v10, %v4665_v50  ;;  %v2868_v4 = vadd.f32 %v2867_v53, %v2588_v39  ;;  %v2146_v30 = vpop.f32.mrb[53].mxu1 }
 0x14b   :  { %v2711_v19 = vadd.f32 %v2710_v9, %v2451_v6  ;;  %v1587_v20 = vadd.f32 %v4665_v50, %v1586_v14  ;;  %v3759_v21 = vpop.f32.mrb[54].mxu0  ;;  %v2591_v14 = vmax.f32 %v2139_v54, 0.0 }
 0x14c   :  { %v1589_v27 = vpop.f32.mrb[55].mxu0  ;;  %v1598_v46 = vadd.f32 %v3759_v21, %v4665_v50  ;;  %v2455_v58 = vmax.f32 %v1595_v32, 0.0  ;;  %v2869_v15 = vadd.f32 %v2868_v4, %v2589_v63 }
 0x14d   :  { %v2453_v35 = vmax.f32 %v1587_v20, 0.0  ;;  %v2712_v36 = vadd.f32 %v2711_v19, %v2452_v13  ;;  %v1590_v37 = vadd.f32 %v4665_v50, %v1589_v27 }
 0x14e   :  { %v2456_v6 = vmax.f32 %v1598_v46, 0.0  ;;  %v2870_v27 = vadd.f32 %v2869_v15, %v2590_v12 }
 0x14f   :  { %v2713_v45 = vadd.f32 %v2712_v36, %v2453_v35  ;;  %v2454_v47 = vmax.f32 %v1590_v37, 0.0  ;;  %v2155_v35 = vadd.f32 %v3898_v23, %v4665_v50  ;;  %v2147_v36 = vadd.f32 %v4665_v50, %v2146_v30  ;;  %v3899_v37 = vpop.f32.mrb[54].mxu1 }
 0x150   :  { %v2871_v38 = vadd.f32 %v2870_v27, %v2591_v14  ;;  %v2158_v39 = vadd.f32 %v3899_v37, %v4665_v50  ;;  %v2149_v40 = vpop.f32.mrb[55].mxu1 }
 0x151   :  { %v2714_v59 = vadd.f32 %v2713_v45, %v2454_v47  ;;  %v3762_v62 = vpop.f32.mrb[56].mxu0  ;;  %v2593_v47 = vmax.f32 %v2147_v36, 0.0  ;;  %v2150_v51 = vadd.f32 %v4665_v50, %v2149_v40  ;;  %v3902_v12 = vpop.f32.mrb[56].mxu1 }
 0x152   :  { %v1602_v1 = vpop.f32.mrb[57].mxu0  ;;  %v1611_v17 = vadd.f32 %v3762_v62, %v4665_v50  ;;  %v4912_v54 = vadd.f32 %v2871_v38, %v2592_v26  ;;  %v2595_v62 = vmax.f32 %v2155_v35, 0.0  ;;  %v2596_v5 = vmax.f32 %v2158_v39, 0.0  ;;  %v2162_v15 = vpop.f32.mrb[57].mxu1 }
 0x153   :  { %v2715_v9 = vadd.f32 %v2714_v59, %v2455_v58  ;;  %v1603_v10 = vadd.f32 %v4665_v50, %v1602_v1  ;;  %v3763_v11 = vpop.f32.mrb[58].mxu0  ;;  %v2594_v63 = vmax.f32 %v2150_v51, 0.0  ;;  %v2171_v14 = vadd.f32 %v3902_v12, %v4665_v50  ;;  %v3903_v23 = vpop.f32.mrb[58].mxu1 }
 0x154   :  { %v1605_v13 = vpop.f32.mrb[59].mxu0  ;;  %v1614_v25 = vadd.f32 %v3763_v11, %v4665_v50  ;;  %v2459_v43 = vmax.f32 %v1611_v17, 0.0  ;;  %v2174_v27 = vadd.f32 %v3903_v23, %v4665_v50  ;;  %v2165_v30 = vpop.f32.mrb[59].mxu1 }
 0x155   :  { %v2457_v19 = vmax.f32 %v1603_v10, 0.0  ;;  %v2716_v20 = vadd.f32 %v2715_v9, %v2456_v6  ;;  %v1606_v21 = vadd.f32 %v4665_v50, %v1605_v13  ;;  %v2879_v11 = vadd.f32 %v2594_v63, %v2593_v47 }
 0x156   :  { %v2460_v52 = vmax.f32 %v1614_v25, 0.0  ;;  %v2689_v25 = vadd.f32 %v2688_v0, %v4844_v41  ;;  %v2166_v37 = vadd.f32 %v4665_v50, %v2165_v30  ;;  %v2599_v40 = vmax.f32 %v2171_v14, 0.0 }
 0x157   :  { %v2717_v31 = vadd.f32 %v2716_v20, %v2457_v19  ;;  %v2458_v32 = vmax.f32 %v1606_v21, 0.0  ;;  %v2880_v20 = vadd.f32 %v2879_v11, %v2595_v62  ;;  %v2163_v21 = vadd.f32 %v4665_v50, %v2162_v15 }
 0x158   :  { %v2598_v51 = vmax.f32 %v2166_v37, 0.0  ;;  %v2690_v41 = vrot.slane %v2689_v25, 2  ;;  %v2600_v62 = vmax.f32 %v2174_v27, 0.0 }
 0x159   :  { %v2718_v45 = vadd.f32 %v2717_v31, %v2458_v32  ;;  %v3766_v46 = vpop.f32.mrb[60].mxu0  ;;  %v2597_v35 = vmax.f32 %v2163_v21, 0.0  ;;  %v2881_v36 = vadd.f32 %v2880_v20, %v2596_v5  ;;  %v3906_v0 = vpop.f32.mrb[60].mxu1 }
 0x15a   :  { %v1618_v53 = vpop.f32.mrb[61].mxu0  ;;  %v1627_v1 = vadd.f32 %v3766_v46, %v4665_v50  ;;  %v2178_v5 = vpop.f32.mrb[61].mxu1  ;;  %v2691_v12 = vadd.f32 %v2690_v41, %v2689_v25 }
 0x15b   :  { %v2719_v57 = vadd.f32 %v2718_v45, %v2459_v43  ;;  %v1619_v58 = vadd.f32 %v4665_v50, %v1618_v53  ;;  %v3767_v59 = vpop.f32.mrb[62].mxu0  ;;  %v2882_v47 = vadd.f32 %v2881_v36, %v2597_v35  ;;  %v3907_v11 = vpop.f32.mrb[62].mxu1 }
 0x15c   :  { %v1621_v4 = vpop.f32.mrb[63].mxu0  ;;  %v1630_v13 = vadd.f32 %v3767_v59, %v4665_v50  ;;  %v2463_v26 = vmax.f32 %v1627_v1, 0.0  ;;  %v2181_v15 = vpop.f32.mrb[63].mxu1 }
 0x15d   :  { %v2461_v6 = vmax.f32 %v1619_v58, 0.0  ;;  %v2720_v9 = vadd.f32 %v2719_v57, %v2460_v52  ;;  %v1622_v10 = vadd.f32 %v4665_v50, %v1621_v4  ;;  %v4929_v58 = vld [vmem:[%s5202_s2] ss:$0 sm:$0xff]  ;;  %v2883_v63 = vadd.f32 %v2882_v47, %v2598_v51 }
 0x15e   :  { %v2464_v38 = vmax.f32 %v1630_v13, 0.0  ;;  %v2187_v14 = vadd.f32 %v4929_v58, %v3906_v0  ;;  %v2190_v30 = vadd.f32 %v4929_v58, %v3907_v11 }
 0x15f   :  { %v2721_v17 = vadd.f32 %v2720_v9, %v2461_v6  ;;  %v2462_v19 = vmax.f32 %v1622_v10, 0.0  ;;  %v2884_v10 = vadd.f32 %v2883_v63, %v2599_v40 }
 0x161   :  { %v2722_v31 = vadd.f32 %v2721_v17, %v2462_v19  ;;  %v3770_v32 = vpop.f32.mrb[64].mxu0  ;;  %v2885_v23 = vadd.f32 %v2884_v10, %v2600_v62 }
 0x162   :  { %v1634_v39 = vpop.f32.mrb[65].mxu0  ;;  %v1643_v52 = vadd.f32 %v3770_v32, %v4665_v50 }
 0x163   :  { %v2723_v43 = vadd.f32 %v2722_v31, %v2463_v26  ;;  %v1635_v45 = vadd.f32 %v4665_v50, %v1634_v39  ;;  %v3771_v46 = vpop.f32.mrb[66].mxu0  ;;  %v2179_v50 = vadd.f32 %v4929_v58, %v2178_v5  ;;  %v2182_v31 = vadd.f32 %v4929_v58, %v2181_v15 }
 0x164   :  { %v1637_v53 = vpop.f32.mrb[67].mxu0  ;;  %v1646_v4 = vadd.f32 %v4929_v58, %v3771_v46  ;;  %v2467_v13 = vmax.f32 %v1643_v52, 0.0  ;;  %v3910_v52 = vpop.f32.mrb[64].mxu1 }
 0x165   :  { %v2724_v57 = vadd.f32 %v2723_v43, %v2464_v38  ;;  %v1638_v59 = vadd.f32 %v4929_v58, %v1637_v53  ;;  %v2465_v1 = vmax.f32 %v1635_v45, 0.0  ;;  %v2601_v21 = vmax.f32 %v2179_v50, 0.0  ;;  %v2194_v62 = vpop.f32.mrb[65].mxu1 }
 0x166   :  { %v2468_v26 = vmax.f32 %v1646_v4, 0.0  ;;  %v2692_v38 = vrot.slane %v2691_v12, 1  ;;  %v2603_v43 = vmax.f32 %v2187_v14, 0.0  ;;  %v2602_v45 = vmax.f32 %v2182_v31, 0.0  ;;  %v3911_v5 = vpop.f32.mrb[66].mxu1 }
 0x167   :  { %v2725_v6 = vrot.slane %v2724_v57, 4  ;;  %v2466_v9 = vmax.f32 %v1638_v59, 0.0  ;;  %v2886_v37 = vadd.f32 %v2885_v23, %v2601_v21  ;;  %v2195_v4 = vadd.f32 %v4929_v58, %v2194_v62  ;;  %v2197_v11 = vpop.f32.mrb[67].mxu1 }
 0x168   :  { %v2203_v50 = vadd.f32 %v4929_v58, %v3910_v52 }
 0x169   :  { %v2726_v17 = vadd.f32 %v2725_v6, %v2724_v57  ;;  %v2731_v19 = vadd.f32 %v2466_v9, %v2465_v1  ;;  %v3774_v20 = vpop.f32.mrb[68].mxu0  ;;  %v2604_v57 = vmax.f32 %v2190_v30, 0.0  ;;  %v2887_v59 = vadd.f32 %v2886_v37, %v2602_v45 }
 0x16a   :  { %v1650_v27 = vpop.f32.mrb[69].mxu0  ;;  %v1659_v39 = vadd.f32 %v4929_v58, %v3774_v20  ;;  %v2693_v6 = vadd.f32 %v2692_v38, %v2691_v12  ;;  %v2607_v37 = vmax.f32 %v2203_v50, 0.0 }
 0x16b   :  { %v2727_v32 = vrot.slane %v2726_v17, 2  ;;  %v2732_v35 = vadd.f32 %v2731_v19, %v2467_v13  ;;  %v1651_v36 = vadd.f32 %v4929_v58, %v1650_v27  ;;  %v3775_v25 = vpop.f32.mrb[70].mxu0  ;;  %v2888_v10 = vadd.f32 %v2887_v59, %v2603_v43 }
 0x16c   :  { %v1653_v40 = vpop.f32.mrb[71].mxu0  ;;  %v1662_v53 = vadd.f32 %v4929_v58, %v3775_v25  ;;  %v2471_v9 = vmax.f32 %v1659_v39, 0.0  ;;  %v2198_v19 = vadd.f32 %v4929_v58, %v2197_v11 }
 0x16d   :  { %v2728_v46 = vadd.f32 %v2727_v32, %v2726_v17  ;;  %v2469_v47 = vmax.f32 %v1651_v36, 0.0  ;;  %v2733_v51 = vadd.f32 %v2732_v35, %v2468_v26  ;;  %v1654_v41 = vadd.f32 %v4929_v58, %v1653_v40  ;;  %v4137_v35 = vld [vmem:[%s5201_s3 + $0x78] ss:$12 sps:$4 sm:$0xff]   ;;  %v4139_v36 = vld [vmem:[%s5201_s3 + $0x7c] ss:$12 sps:$4 sm:$0xff]  }
 0x16e   :  { %v2605_v17 = vmax.f32 %v2195_v4, 0.0  ;;  %v2472_v20 = vmax.f32 %v1662_v53, 0.0  ;;  %v2889_v23 = vadd.f32 %v2888_v10, %v2604_v57  ;;  %v2206_v26 = vadd.f32 %v4929_v58, %v3911_v5  ;;  %3158 = vmatprep.subr.bf16.mxu1 %v4139_v36 }
 0x16f   :  { %v2729_v63 = vrot.slane %v2728_v46, 1  ;;  %v2734_v0 = vadd.f32 %v2733_v51, %v2469_v47  ;;  %v2470_v1 = vmax.f32 %v1654_v41, 0.0  ;;  %v2606_v32 = vmax.f32 %v2198_v19, 0.0  ;;  %3159 = vmatpush1.bf16.msra.mxu1 %v4137_v35 }
 0x170   :  { %v2890_v38 = vadd.f32 %v2889_v23, %v2605_v17  ;;  %v2608_v47 = vmax.f32 %v2206_v26, 0.0 }
 0x171   :  { %v2730_v13 = vadd.f32 %v2729_v63, %v2728_v46  ;;  %v2735_v14 = vadd.f32 %v2734_v0, %v2470_v1  ;;  %v3778_v15 = vpop.f32.mrb[72].mxu0  ;;  %v3914_v46 = vpop.f32.mrb[68].mxu1 }
 0x172   :  { %v1666_v21 = vpop.f32.mrb[73].mxu0  ;;  %v1675_v39 = vadd.f32 %v4929_v58, %v3778_v15  ;;  %v2891_v51 = vadd.f32 %v2890_v38, %v2606_v32  ;;  %v2210_v41 = vpop.f32.mrb[69].mxu1  ;;  %v2219_v0 = vadd.f32 %v4929_v58, %v3914_v46 }
 0x173   :  { %v4946_v27 = vsel %vm2953_vm2, %v2693_v6, %v2730_v13  ;;  %v2736_v12 = vadd.f32 %v2735_v14, %v2471_v9  ;;  %v1667_v30 = vadd.f32 %v4929_v58, %v1666_v21  ;;  %v3779_v31 = vpop.f32.mrb[74].mxu0  ;;  %v2211_v59 = vadd.f32 %v4929_v58, %v2210_v41  ;;  %v3915_v62 = vpop.f32.mrb[70].mxu1 }
 0x174   :  { %v1669_v25 = vpop.f32.mrb[75].mxu0  ;;  %v1678_v53 = vadd.f32 %v4929_v58, %v3779_v31  ;;  %v2892_v63 = vadd.f32 %v2891_v51, %v2607_v37  ;;  %v2213_v1 = vpop.f32.mrb[71].mxu1  ;;  %v2475_v4 = vmax.f32 %v1675_v39, 0.0  ;;  %v2222_v13 = vadd.f32 %v4929_v58, %v3915_v62 }
 0x175   :  { %v2473_v40 = vmax.f32 %v1667_v30, 0.0  ;;  %v2737_v43 = vadd.f32 %v2736_v12, %v2472_v20  ;;  %v1670_v45 = vadd.f32 %v4929_v58, %v1669_v25  ;;  %v2609_v9 = vmax.f32 %v2211_v59, 0.0  ;;  %v3918_v35 = vpop.f32.mrb[72].mxu1 }
 0x176   :  { %v2214_v10 = vadd.f32 %v4929_v58, %v2213_v1  ;;  %v2893_v11 = vadd.f32 %v2892_v63, %v2608_v47  ;;  %v2476_v14 = vmax.f32 %v1678_v53, 0.0  ;;  %v2611_v23 = vmax.f32 %v2219_v0, 0.0  ;;  %v2226_v37 = vpop.f32.mrb[73].mxu1 }
 0x177   :  { %v2738_v52 = vadd.f32 %v2737_v43, %v2473_v40  ;;  %v2474_v57 = vmax.f32 %v1670_v45, 0.0  ;;  %v2612_v36 = vmax.f32 %v2222_v13, 0.0  ;;  %v2227_v43 = vadd.f32 %v4929_v58, %v2226_v37  ;;  %v3919_v45 = vpop.f32.mrb[74].mxu1 }
 0x178   :  { %v2610_v20 = vmax.f32 %v2214_v10, 0.0  ;;  %v2894_v26 = vadd.f32 %v2893_v11, %v2609_v9  ;;  %v2235_v47 = vadd.f32 %v4929_v58, %v3918_v35  ;;  %v2229_v51 = vpop.f32.mrb[75].mxu1  ;;  %v2238_v0 = vadd.f32 %v4929_v58, %v3919_v45 }
 0x179   :  { %v2739_v5 = vadd.f32 %v2738_v52, %v2474_v57  ;;  %v3782_v6 = vpop.f32.mrb[76].mxu0  ;;  %v2613_v57 = vmax.f32 %v2227_v43, 0.0  ;;  %v2230_v59 = vadd.f32 %v4929_v58, %v2229_v51 }
 0x17a   :  { %v1682_v50 = vpop.f32.mrb[77].mxu0  ;;  %v1691_v12 = vadd.f32 %v4929_v58, %v3782_v6  ;;  %v2895_v25 = vadd.f32 %v2894_v26, %v2610_v20  ;;  %v2616_v20 = vmax.f32 %v2238_v0, 0.0 }
 0x17b   :  { %v2740_v15 = vadd.f32 %v2739_v5, %v2475_v4  ;;  %v1683_v17 = vadd.f32 %v4929_v58, %v1682_v50  ;;  %v3783_v19 = vpop.f32.mrb[78].mxu0  ;;  %v2614_v9 = vmax.f32 %v2230_v59, 0.0  ;;  %v2615_v50 = vmax.f32 %v2235_v47, 0.0 }
 0x17c   :  { %v1685_v21 = vpop.f32.mrb[79].mxu0  ;;  %v1694_v39 = vadd.f32 %v4929_v58, %v3783_v19  ;;  %v2896_v46 = vadd.f32 %v2895_v25, %v2611_v23  ;;  %v2479_v41 = vmax.f32 %v1691_v12, 0.0  ;;  %v3922_v19 = vpop.f32.mrb[76].mxu1 }
 0x17d   :  { %v2477_v30 = vmax.f32 %v1683_v17, 0.0  ;;  %v2741_v31 = vadd.f32 %v2740_v15, %v2476_v14  ;;  %v1686_v32 = vadd.f32 %v4929_v58, %v1685_v21  ;;  %v2242_v23 = vpop.f32.mrb[77].mxu1 }
 0x17e   :  { %v2897_v63 = vadd.f32 %v2896_v46, %v2612_v36  ;;  %v2480_v1 = vmax.f32 %v1694_v39, 0.0  ;;  %v2251_v36 = vadd.f32 %v4929_v58, %v3922_v19 }
 0x17f   :  { %v2742_v38 = vadd.f32 %v2741_v31, %v2477_v30  ;;  %v2478_v40 = vmax.f32 %v1686_v32, 0.0  ;;  %v2243_v31 = vadd.f32 %v4929_v58, %v2242_v23  ;;  %v3923_v32 = vpop.f32.mrb[78].mxu1 }
 0x180   :  { %v2898_v11 = vadd.f32 %v2897_v63, %v2613_v57  ;;  %v2245_v25 = vpop.f32.mrb[79].mxu1  ;;  %v2254_v47 = vadd.f32 %v4929_v58, %v3923_v32 }
 0x181   :  { %v2743_v52 = vadd.f32 %v2742_v38, %v2478_v40  ;;  %v3786_v53 = vpop.f32.mrb[80].mxu0  ;;  %v2617_v40 = vmax.f32 %v2243_v31, 0.0  ;;  %v2246_v43 = vadd.f32 %v4929_v58, %v2245_v25 }
 0x182   :  { %v1698_v62 = vpop.f32.mrb[81].mxu0  ;;  %v1707_v13 = vadd.f32 %v4929_v58, %v3786_v53  ;;  %v2899_v21 = vadd.f32 %v2898_v11, %v2614_v9  ;;  %v2620_v9 = vmax.f32 %v2254_v47, 0.0 }
 0x183   :  { %v2744_v4 = vadd.f32 %v2743_v52, %v2479_v41  ;;  %v1699_v5 = vadd.f32 %v4929_v58, %v1698_v62  ;;  %v3787_v6 = vpop.f32.mrb[82].mxu0  ;;  %v2618_v57 = vmax.f32 %v2246_v43, 0.0  ;;  %v2619_v62 = vmax.f32 %v2251_v36, 0.0 }
 0x184   :  { %v1701_v10 = vpop.f32.mrb[83].mxu0  ;;  %v1710_v12 = vadd.f32 %v4929_v58, %v3787_v6  ;;  %v2900_v35 = vadd.f32 %v2899_v21, %v2615_v50  ;;  %v2483_v37 = vmax.f32 %v1707_v13, 0.0  ;;  %v3926_v6 = vpop.f32.mrb[80].mxu1 }
 0x185   :  { %v2481_v14 = vmax.f32 %v1699_v5, 0.0  ;;  %v2745_v15 = vadd.f32 %v2744_v4, %v2480_v1  ;;  %v1702_v17 = vadd.f32 %v4929_v58, %v1701_v10  ;;  %v2258_v50 = vpop.f32.mrb[81].mxu1 }
 0x186   :  { %v2901_v46 = vadd.f32 %v2900_v35, %v2616_v20  ;;  %v2484_v51 = vmax.f32 %v1710_v12, 0.0  ;;  %v2267_v20 = vadd.f32 %v4929_v58, %v3926_v6 }
 0x187   :  { %v2746_v26 = vadd.f32 %v2745_v15, %v2481_v14  ;;  %v2482_v30 = vmax.f32 %v1702_v17, 0.0  ;;  %v2259_v15 = vadd.f32 %v4929_v58, %v2258_v50  ;;  %v3927_v17 = vpop.f32.mrb[82].mxu1 }
 0x188   :  { %v2902_v63 = vadd.f32 %v2901_v46, %v2617_v40  ;;  %v2261_v21 = vpop.f32.mrb[83].mxu1  ;;  %v2270_v36 = vadd.f32 %v4929_v58, %v3927_v17 }
 0x189   :  { %v2747_v38 = vadd.f32 %v2746_v26, %v2482_v30  ;;  %v3790_v39 = vpop.f32.mrb[84].mxu0  ;;  %v2621_v30 = vmax.f32 %v2259_v15, 0.0  ;;  %v2262_v31 = vadd.f32 %v4929_v58, %v2261_v21 }
 0x18a   :  { %v1714_v45 = vpop.f32.mrb[85].mxu0  ;;  %v1723_v0 = vadd.f32 %v4929_v58, %v3790_v39  ;;  %v2903_v10 = vadd.f32 %v2902_v63, %v2618_v57 }
 0x18b   :  { %v2748_v41 = vadd.f32 %v2747_v38, %v2483_v37  ;;  %v1715_v52 = vadd.f32 %v4929_v58, %v1714_v45  ;;  %v3791_v53 = vpop.f32.mrb[86].mxu0  ;;  %v2622_v40 = vmax.f32 %v2262_v31, 0.0  ;;  %v2623_v45 = vmax.f32 %v2267_v20, 0.0 }
 0x18c   :  { %v1717_v59 = vpop.f32.mrb[87].mxu0  ;;  %v1726_v13 = vadd.f32 %v4929_v58, %v3791_v53  ;;  %v2904_v19 = vadd.f32 %v2903_v10, %v2619_v62  ;;  %v2487_v23 = vmax.f32 %v1723_v0, 0.0  ;;  %v3930_v53 = vpop.f32.mrb[84].mxu1 }
 0x18d   :  { %v2485_v1 = vmax.f32 %v1715_v52, 0.0  ;;  %v2749_v4 = vadd.f32 %v2748_v41, %v2484_v51  ;;  %v1718_v5 = vadd.f32 %v4929_v58, %v1717_v59  ;;  %v2624_v59 = vmax.f32 %v2270_v36, 0.0  ;;  %v2274_v0 = vpop.f32.mrb[85].mxu1 }
 0x18e   :  { %v2905_v35 = vadd.f32 %v2904_v19, %v2620_v9  ;;  %v2488_v25 = vmax.f32 %v1726_v13, 0.0  ;;  %v2283_v63 = vadd.f32 %v4929_v58, %v3930_v53  ;;  %v3931_v6 = vpop.f32.mrb[86].mxu1  ;;  %v4143_v53 = vld [vmem:[%s5201_s3 + $0xa8] ss:$12 sps:$4 sm:$0xff]  }
 0x18f   :  { %v2750_v11 = vadd.f32 %v2749_v4, %v2485_v1  ;;  %v2486_v14 = vmax.f32 %v1718_v5, 0.0  ;;  %v2275_v5 = vadd.f32 %v4929_v58, %v2274_v0  ;;  %v2286_v10 = vadd.f32 %v4929_v58, %v3931_v6  ;;  %v2277_v50 = vpop.f32.mrb[87].mxu1 }
 0x190   :  { %v2906_v46 = vadd.f32 %v2905_v35, %v2621_v30  ;;  %v2278_v17 = vadd.f32 %v4929_v58, %v2277_v50  ;;  %v4142_v35 = vld [vmem:[%s5201_s3 + $0x94] ss:$12 sps:$4 sm:$0xff]  }
 0x191   :  { %v2751_v26 = vadd.f32 %v2750_v11, %v2486_v14  ;;  %v3794_v12 = vpop.f32.mrb[88].mxu0  ;;  %v2625_v15 = vmax.f32 %v2275_v5, 0.0  ;;  %3160 = vmatprep.subr.bf16.mxu1 %v4142_v35 }
 0x192   :  { %v1730_v32 = vpop.f32.mrb[89].mxu0  ;;  %v1739_v47 = vadd.f32 %v4929_v58, %v3794_v12  ;;  %v2907_v62 = vadd.f32 %v2906_v46, %v2622_v40  ;;  %v2626_v31 = vmax.f32 %v2278_v17, 0.0  ;;  %v4145_v46 = vld [vmem:[%s5201_s3 + $0xac] ss:$12 sps:$4 sm:$0xff]  }
 0x193   :  { %v2752_v37 = vadd.f32 %v2751_v26, %v2487_v23  ;;  %v1731_v38 = vadd.f32 %v4929_v58, %v1730_v32  ;;  %v3795_v39 = vpop.f32.mrb[90].mxu0  ;;  %v2627_v23 = vmax.f32 %v2283_v63, 0.0  ;;  %v4140_v32 = vld [vmem:[%s5201_s3 + $0x90] ss:$12 sps:$4 sm:$0xff]  }
 0x194   :  { %v1733_v43 = vpop.f32.mrb[91].mxu0  ;;  %v1742_v57 = vadd.f32 %v4929_v58, %v3795_v39  ;;  %v2908_v9 = vadd.f32 %v2907_v62, %v2623_v45  ;;  %v2491_v11 = vmax.f32 %v1739_v47, 0.0  ;;  %v3934_v45 = vpop.f32.mrb[88].mxu1  ;;  %v4162_v47 = vmov 0   ;;  %3161 = vmatpush1.bf16.msra.mxu1 %v4140_v32 }
 0x195   :  { %v2489_v51 = vmax.f32 %v1731_v38, 0.0  ;;  %v2753_v41 = vadd.f32 %v2752_v37, %v2488_v25  ;;  %v1734_v52 = vadd.f32 %v4929_v58, %v1733_v43  ;;  %v2628_v37 = vmax.f32 %v2286_v10, 0.0  ;;  %3180 = vmatprep.mubr.bf16.mxu1 %v4162_v47  ;;  %3162 = vmatprep.subr.bf16.mxu1 %v4145_v46 }
 0x196   :  { %v2492_v19 = vmax.f32 %v1742_v57, 0.0  ;;  %v4994_v21 = vadd.f32 %v2908_v9, %v2624_v59  ;;  %v2916_v43 = vadd.f32 %v2626_v31, %v2625_v15 }
 0x197   :  { %v2754_v1 = vadd.f32 %v2753_v41, %v2489_v51  ;;  %v2490_v4 = vmax.f32 %v1734_v52, 0.0  ;;  %v2299_v41 = vadd.f32 %v4929_v58, %v3934_v45  ;;  %v2290_v52 = vpop.f32.mrb[89].mxu1 }
 0x198   :  { %v2917_v62 = vadd.f32 %v2916_v43, %v2627_v23  ;;  %v2291_v63 = vadd.f32 %v4929_v58, %v2290_v52  ;;  %v3935_v0 = vpop.f32.mrb[90].mxu1  ;;  %3163 = vmatpush1.bf16.msra.mxu1 %v4143_v53 }
 0x199   :  { %v2755_v13 = vadd.f32 %v2754_v1, %v2490_v4  ;;  %v3798_v14 = vpop.f32.mrb[92].mxu0  ;;  %v2302_v4 = vadd.f32 %v4929_v58, %v3935_v0  ;;  %v2293_v5 = vpop.f32.mrb[91].mxu1  ;;  %v2631_v15 = vmax.f32 %v2299_v41, 0.0 }
 0x19a   :  { %v1746_v20 = vpop.f32.mrb[93].mxu0  ;;  %v1755_v36 = vadd.f32 %v4929_v58, %v3798_v14  ;;  %v2629_v10 = vmax.f32 %v2291_v63, 0.0  ;;  %v2918_v50 = vadd.f32 %v2917_v62, %v2628_v37  ;;  %v3938_v37 = vpop.f32.mrb[92].mxu1 }
 0x19b   :  { %v2756_v26 = vadd.f32 %v2755_v13, %v2491_v11  ;;  %v1747_v12 = vadd.f32 %v4929_v58, %v1746_v20  ;;  %v3799_v30 = vpop.f32.mrb[94].mxu0  ;;  %v2294_v11 = vadd.f32 %v4929_v58, %v2293_v5  ;;  %v2315_v52 = vadd.f32 %v4929_v58, %v3938_v37 }
 0x19c   :  { %v1749_v25 = vpop.f32.mrb[95].mxu0  ;;  %v1758_v51 = vadd.f32 %v4929_v58, %v3799_v30  ;;  %v2495_v1 = vmax.f32 %v1755_v36, 0.0  ;;  %v2919_v23 = vadd.f32 %v2918_v50, %v2629_v10  ;;  %v2632_v36 = vmax.f32 %v2302_v4, 0.0 }
 0x19d   :  { %v2493_v38 = vmax.f32 %v1747_v12, 0.0  ;;  %v2757_v39 = vadd.f32 %v2756_v26, %v2492_v19  ;;  %v1750_v40 = vadd.f32 %v4929_v58, %v1749_v25  ;;  %v2630_v26 = vmax.f32 %v2294_v11, 0.0 }
 0x19e   :  { %v2496_v13 = vmax.f32 %v1758_v51, 0.0  ;;  %v4163_v12 = vmov 0.0  }
 0x19f   :  { %v2758_v57 = vadd.f32 %v2757_v39, %v2493_v38  ;;  %v2494_v59 = vmax.f32 %v1750_v40, 0.0  ;;  %3960 = vmatprep.subr.bf16.mxu1 %v4163_v12  ;;  %v2920_v25 = vadd.f32 %v2919_v23, %v2630_v26  ;;  %v2306_v40 = vpop.f32.mrb[93].mxu1 }
 0x1a0   :  { %v2307_v47 = vadd.f32 %v4929_v58, %v2306_v40  ;;  %v3939_v51 = vpop.f32.mrb[94].mxu1 }
 0x1a1   :  { %v2759_v6 = vadd.f32 %v2758_v57, %v2494_v59  ;;  %v3802_v9 = vpop.f32.mrb[96].mxu0  ;;  %v2921_v46 = vadd.f32 %v2920_v25, %v2631_v15  ;;  %v2309_v53 = vpop.f32.mrb[95].mxu1  ;;  %v2318_v5 = vadd.f32 %v4929_v58, %v3939_v51 }
 0x1a2   :  { %v1762_v14 = vpop.f32.mrb[97].mxu0  ;;  %v1771_v30 = vadd.f32 %v4929_v58, %v3802_v9  ;;  %v2633_v63 = vmax.f32 %v2307_v47, 0.0 }
 0x1a3   :  { %v2760_v17 = vadd.f32 %v2759_v6, %v2495_v1  ;;  %v1763_v19 = vadd.f32 %v4929_v58, %v1762_v14  ;;  %v3803_v20 = vpop.f32.mrb[98].mxu0  ;;  %v2922_v0 = vadd.f32 %v2921_v46, %v2632_v36  ;;  %v2310_v6 = vadd.f32 %v4929_v58, %v2309_v53 }
 0x1a4   :  { %v1765_v31 = vpop.f32.mrb[99].mxu0  ;;  %v1774_v39 = vadd.f32 %v4929_v58, %v3803_v20  ;;  %v2499_v41 = vmax.f32 %v1771_v30, 0.0 }
 0x1a5   :  { %v2761_v32 = vadd.f32 %v2760_v17, %v2496_v13  ;;  %v1766_v35 = vadd.f32 %v4929_v58, %v1765_v31  ;;  %v2497_v38 = vmax.f32 %v1763_v19, 0.0  ;;  %v2923_v13 = vadd.f32 %v2922_v0, %v2633_v63  ;;  %v3942_v31 = vpop.f32.mrb[96].mxu1 }
 0x1a6   :  { %v2500_v1 = vmax.f32 %v1774_v39, 0.0  ;;  %v2635_v17 = vmax.f32 %v2315_v52, 0.0  ;;  %v2634_v19 = vmax.f32 %v2310_v6, 0.0  ;;  %v2322_v25 = vpop.f32.mrb[97].mxu1  ;;  %v2331_v47 = vadd.f32 %v4929_v58, %v3942_v31 }
 0x1a7   :  { %v2762_v43 = vrot.slane %v2761_v32, 4  ;;  %v2498_v45 = vmax.f32 %v1766_v35, 0.0  ;;  %v2636_v35 = vmax.f32 %v2318_v5, 0.0  ;;  %v2323_v40 = vadd.f32 %v4929_v58, %v2322_v25 }
 0x1a8   :  { %v2924_v36 = vadd.f32 %v2923_v13, %v2634_v19 }
 0x1a9   :  { %v2763_v57 = vadd.f32 %v2762_v43, %v2761_v32  ;;  %v2768_v59 = vadd.f32 %v2498_v45, %v2497_v38  ;;  %v3806_v62 = vpop.f32.mrb[100].mxu0  ;;  %v3943_v43 = vpop.f32.mrb[98].mxu1 }
 0x1aa   :  { %v1778_v4 = vpop.f32.mrb[101].mxu0  ;;  %v1787_v14 = vadd.f32 %v4929_v58, %v3806_v62  ;;  %v2925_v46 = vadd.f32 %v2924_v36, %v2635_v17  ;;  %v2325_v51 = vpop.f32.mrb[99].mxu1 }
 0x1ab   :  { %v2764_v9 = vrot.slane %v2763_v57, 2  ;;  %v2769_v10 = vadd.f32 %v2768_v59, %v2499_v41  ;;  %v1779_v50 = vadd.f32 %v4929_v58, %v1778_v4  ;;  %v3807_v11 = vpop.f32.mrb[102].mxu0  ;;  %v2326_v59 = vadd.f32 %v4929_v58, %v2325_v51 }
 0x1ac   :  { %v1781_v15 = vpop.f32.mrb[103].mxu0  ;;  %v1790_v32 = vadd.f32 %v4929_v58, %v3807_v11  ;;  %v2503_v45 = vmax.f32 %v1787_v14, 0.0  ;;  %v2926_v0 = vadd.f32 %v2925_v46, %v2636_v35  ;;  %v2639_v11 = vmax.f32 %v2331_v47, 0.0 }
 0x1ad   :  { %v2765_v20 = vadd.f32 %v2764_v9, %v2763_v57  ;;  %v2501_v23 = vmax.f32 %v1779_v50, 0.0  ;;  %v2770_v26 = vadd.f32 %v2769_v10, %v2500_v1  ;;  %v1782_v30 = vadd.f32 %v4929_v58, %v1781_v15 }
 0x1ae   :  { %v2637_v57 = vmax.f32 %v2323_v40, 0.0  ;;  %v2504_v62 = vmax.f32 %v1790_v32, 0.0  ;;  %v2334_v1 = vadd.f32 %v4929_v58, %v3943_v43  ;;  %v2638_v10 = vmax.f32 %v2326_v59, 0.0 }
 0x1af   :  { %v2766_v37 = vrot.slane %v2765_v20, 1  ;;  %v2771_v38 = vadd.f32 %v2770_v26, %v2501_v23  ;;  %v2502_v39 = vmax.f32 %v1782_v30, 0.0 }
 0x1b0   :  { %v2927_v13 = vadd.f32 %v2926_v0, %v2637_v57  ;;  %v2640_v23 = vmax.f32 %v2334_v1, 0.0 }
 0x1b1   :  { %v2767_v41 = vadd.f32 %v2766_v37, %v2765_v20  ;;  %v2772_v52 = vadd.f32 %v2771_v38, %v2502_v39  ;;  %v3810_v53 = vpop.f32.mrb[104].mxu0  ;;  %v3946_v20 = vpop.f32.mrb[100].mxu1 }
 0x1b2   :  { %v1794_v63 = vpop.f32.mrb[105].mxu0  ;;  %v1803_v14 = vadd.f32 %v4929_v58, %v3810_v53  ;;  %v2928_v26 = vadd.f32 %v2927_v13, %v2638_v10  ;;  %v2338_v30 = vpop.f32.mrb[101].mxu1  ;;  %v2347_v37 = vadd.f32 %v4929_v58, %v3946_v20 }
 0x1b3   :  { %v5035_v4 = vsel %vm1340_vm1, %v4946_v27, %v2767_v41  ;;  %v2773_v5 = vadd.f32 %v2772_v52, %v2503_v45  ;;  %v1795_v6 = vadd.f32 %v4929_v58, %v1794_v63  ;;  %v3811_v9 = vpop.f32.mrb[106].mxu0  ;;  %v2339_v35 = vadd.f32 %v4929_v58, %v2338_v30  ;;  %v3947_v36 = vpop.f32.mrb[102].mxu1 }
 0x1b4   :  { %v1797_v50 = vpop.f32.mrb[107].mxu0  ;;  %v1806_v31 = vadd.f32 %v4929_v58, %v3811_v9  ;;  %v2929_v25 = vadd.f32 %v2928_v26, %v2639_v11  ;;  %v2341_v38 = vpop.f32.mrb[103].mxu1  ;;  %v2507_v39 = vmax.f32 %v1803_v14, 0.0  ;;  %v2350_v41 = vadd.f32 %v4929_v58, %v3947_v36 }
 0x1b5   :  { %v2505_v15 = vmax.f32 %v1795_v6, 0.0  ;;  %v2774_v17 = vadd.f32 %v2773_v5, %v2504_v62  ;;  %v1798_v19 = vadd.f32 %v4929_v58, %v1797_v50  ;;  %v2641_v45 = vmax.f32 %v2339_v35, 0.0  ;;  %v3950_v50 = vpop.f32.mrb[104].mxu1 }
 0x1b6   :  { %v2342_v46 = vadd.f32 %v4929_v58, %v2341_v38  ;;  %v2930_v51 = vadd.f32 %v2929_v25, %v2640_v23  ;;  %v2508_v52 = vmax.f32 %v1806_v31, 0.0  ;;  %v2643_v0 = vmax.f32 %v2347_v37, 0.0  ;;  %v2354_v14 = vpop.f32.mrb[105].mxu1 }
 0x1b7   :  { %v2775_v27 = vadd.f32 %v2774_v17, %v2505_v15  ;;  %v2506_v32 = vmax.f32 %v1798_v19, 0.0  ;;  %v2644_v11 = vmax.f32 %v2350_v41, 0.0  ;;  %v2355_v20 = vadd.f32 %v4929_v58, %v2354_v14  ;;  %v3951_v23 = vpop.f32.mrb[106].mxu1 }
 0x1b8   :  { %v2642_v62 = vmax.f32 %v2342_v46, 0.0  ;;  %v2931_v1 = vadd.f32 %v2930_v51, %v2641_v45  ;;  %v2363_v30 = vadd.f32 %v4929_v58, %v3950_v50 }
 0x1b9   :  { %v2776_v40 = vadd.f32 %v2775_v27, %v2506_v32  ;;  %v3814_v43 = vpop.f32.mrb[108].mxu0  ;;  %v2357_v27 = vpop.f32.mrb[107].mxu1  ;;  %v2645_v36 = vmax.f32 %v2355_v20, 0.0 }
 0x1ba   :  { %v1810_v47 = vpop.f32.mrb[109].mxu0  ;;  %v1819_v5 = vadd.f32 %v4929_v58, %v3814_v43  ;;  %v2932_v13 = vadd.f32 %v2931_v1, %v2642_v62  ;;  %v2358_v25 = vadd.f32 %v4929_v58, %v2357_v27  ;;  %v2647_v41 = vmax.f32 %v2363_v30, 0.0 }
 0x1bb   :  { %v2777_v53 = vadd.f32 %v2776_v40, %v2507_v39  ;;  %v1811_v57 = vadd.f32 %v4929_v58, %v1810_v47  ;;  %v3815_v59 = vpop.f32.mrb[110].mxu0  ;;  %v2366_v39 = vadd.f32 %v4929_v58, %v3951_v23 }
 0x1bc   :  { %v1813_v63 = vpop.f32.mrb[111].mxu0  ;;  %v1822_v17 = vadd.f32 %v4929_v58, %v3815_v59  ;;  %v2933_v26 = vadd.f32 %v2932_v13, %v2643_v0  ;;  %v2511_v31 = vmax.f32 %v1819_v5, 0.0  ;;  %v2646_v47 = vmax.f32 %v2358_v25, 0.0 }
 0x1bd   :  { %v2509_v6 = vmax.f32 %v1811_v57, 0.0  ;;  %v2778_v9 = vadd.f32 %v2777_v53, %v2508_v52  ;;  %v1814_v10 = vadd.f32 %v4929_v58, %v1813_v63  ;;  %v3954_v63 = vpop.f32.mrb[108].mxu1  ;;  %v2648_v0 = vmax.f32 %v2366_v39, 0.0 }
 0x1be   :  { %v2934_v38 = vadd.f32 %v2933_v26, %v2644_v11  ;;  %v2512_v40 = vmax.f32 %v1822_v17, 0.0  ;;  %v2370_v5 = vpop.f32.mrb[109].mxu1  ;;  %v2379_v14 = vadd.f32 %v4929_v58, %v3954_v63 }
 0x1bf   :  { %v2779_v15 = vadd.f32 %v2778_v9, %v2509_v6  ;;  %v2510_v19 = vmax.f32 %v1814_v10, 0.0  ;;  %v2371_v50 = vadd.f32 %v4929_v58, %v2370_v5  ;;  %v3955_v11 = vpop.f32.mrb[110].mxu1 }
 0x1c0   :  { %v2935_v52 = vadd.f32 %v2934_v38, %v2645_v36  ;;  %v2651_v39 = vmax.f32 %v2379_v14, 0.0 }
 0x1c1   :  { %v2780_v32 = vadd.f32 %v2779_v15, %v2510_v19  ;;  %v3818_v35 = vpop.f32.mrb[112].mxu0  ;;  %v2373_v15 = vpop.f32.mrb[111].mxu1  ;;  %v2649_v23 = vmax.f32 %v2371_v50, 0.0 }
 0x1c2   :  { %v1826_v37 = vpop.f32.mrb[113].mxu0  ;;  %v1835_v53 = vadd.f32 %v4929_v58, %v3818_v35  ;;  %v2936_v1 = vadd.f32 %v2935_v52, %v2646_v47  ;;  %v2374_v26 = vadd.f32 %v4929_v58, %v2373_v15 }
 0x1c3   :  { %v2781_v43 = vadd.f32 %v2780_v32, %v2511_v31  ;;  %v1827_v45 = vadd.f32 %v4929_v58, %v1826_v37  ;;  %v3819_v46 = vpop.f32.mrb[114].mxu0  ;;  %v2382_v31 = vadd.f32 %v4929_v58, %v3955_v11 }
 0x1c4   :  { %v1829_v51 = vpop.f32.mrb[115].mxu0  ;;  %v1838_v9 = vadd.f32 %v4929_v58, %v3819_v46  ;;  %v2937_v13 = vadd.f32 %v2936_v1, %v2647_v41  ;;  %v2515_v17 = vmax.f32 %v1835_v53, 0.0  ;;  %v2650_v37 = vmax.f32 %v2374_v26, 0.0 }
 0x1c5   :  { %v2513_v57 = vmax.f32 %v1827_v45, 0.0  ;;  %v2782_v59 = vadd.f32 %v2781_v43, %v2512_v40  ;;  %v1830_v62 = vadd.f32 %v4929_v58, %v1829_v51  ;;  %v3958_v51 = vpop.f32.mrb[112].mxu1  ;;  %v2652_v41 = vmax.f32 %v2382_v31, 0.0 }
 0x1c6   :  { %v2938_v27 = vadd.f32 %v2937_v13, %v2648_v0  ;;  %v2516_v32 = vmax.f32 %v1838_v9, 0.0  ;;  %v2386_v53 = vpop.f32.mrb[113].mxu1  ;;  %v2395_v5 = vadd.f32 %v4929_v58, %v3958_v51 }
 0x1c7   :  { %v2783_v6 = vadd.f32 %v2782_v59, %v2513_v57  ;;  %v2514_v10 = vmax.f32 %v1830_v62, 0.0  ;;  %v2387_v63 = vadd.f32 %v4929_v58, %v2386_v53  ;;  %v3959_v0 = vpop.f32.mrb[114].mxu1 }
 0x1c8   :  { %v2939_v40 = vadd.f32 %v2938_v27, %v2649_v23  ;;  %v2655_v31 = vmax.f32 %v2395_v5, 0.0 }
 0x1c9   :  { %v2784_v19 = vadd.f32 %v2783_v6, %v2514_v10  ;;  %v3822_v20 = vpop.f32.mrb[116].mxu0  ;;  %v2389_v6 = vpop.f32.mrb[115].mxu1  ;;  %v2653_v11 = vmax.f32 %v2387_v63, 0.0 }
 0x1ca   :  { %v1842_v30 = vpop.f32.mrb[117].mxu0  ;;  %v1851_v43 = vadd.f32 %v4929_v58, %v3822_v20  ;;  %v2940_v52 = vadd.f32 %v2939_v40, %v2650_v37  ;;  %v2390_v13 = vadd.f32 %v4929_v58, %v2389_v6 }
 0x1cb   :  { %v2785_v35 = vadd.f32 %v2784_v19, %v2515_v17  ;;  %v1843_v36 = vadd.f32 %v4929_v58, %v1842_v30  ;;  %v3823_v25 = vpop.f32.mrb[118].mxu0  ;;  %v2398_v17 = vadd.f32 %v4929_v58, %v3959_v0 }
 0x1cc   :  { %v1845_v38 = vpop.f32.mrb[119].mxu0  ;;  %v1854_v59 = vadd.f32 %v4929_v58, %v3823_v25  ;;  %v2941_v1 = vadd.f32 %v2940_v52, %v2651_v39  ;;  %v2519_v9 = vmax.f32 %v1851_v43, 0.0  ;;  %v2654_v30 = vmax.f32 %v2390_v13, 0.0 }
 0x1cd   :  { %v2517_v45 = vmax.f32 %v1843_v36, 0.0  ;;  %v2786_v46 = vadd.f32 %v2785_v35, %v2516_v32  ;;  %v1846_v47 = vadd.f32 %v4929_v58, %v1845_v38  ;;  %v2656_v38 = vmax.f32 %v2398_v17, 0.0 }
 0x1ce   :  { %v2942_v15 = vadd.f32 %v2941_v1, %v2652_v41  ;;  %v2520_v19 = vmax.f32 %v1854_v59, 0.0 }
 0x1cf   :  { %v2787_v57 = vadd.f32 %v2786_v46, %v2517_v45  ;;  %v2518_v62 = vmax.f32 %v1846_v47, 0.0 }
 0x1d0   :  { %v2943_v32 = vadd.f32 %v2942_v15, %v2653_v11 }
 0x1d1   :  { %v2788_v10 = vadd.f32 %v2787_v57, %v2518_v62  ;;  %v3826_v50 = vpop.f32.mrb[120].mxu0 }
 0x1d2   :  { %v1858_v14 = vpop.f32.mrb[121].mxu0  ;;  %v1867_v35 = vadd.f32 %v4929_v58, %v3826_v50  ;;  %v2944_v39 = vadd.f32 %v2943_v32, %v2654_v30 }
 0x1d3   :  { %v2789_v20 = vadd.f32 %v2788_v10, %v2519_v9  ;;  %v1859_v23 = vadd.f32 %v4929_v58, %v1858_v14  ;;  %v3827_v26 = vpop.f32.mrb[122].mxu0 }
 0x1d4   :  { %v1861_v27 = vpop.f32.mrb[123].mxu0  ;;  %v1870_v43 = vadd.f32 %v4929_v58, %v3827_v26  ;;  %v2945_v46 = vadd.f32 %v2944_v39, %v2655_v31  ;;  %v2523_v47 = vmax.f32 %v1867_v35, 0.0  ;;  %v5083_v31 = vld [vmem:[%s5202_s2] ss:$0 sm:$0xff] }
 0x1d5   :  { %v2521_v36 = vmax.f32 %v1859_v23, 0.0  ;;  %v2790_v25 = vadd.f32 %v2789_v20, %v2520_v19  ;;  %v1862_v37 = vadd.f32 %v4929_v58, %v1861_v27 }
 0x1d6   :  { %v5073_v53 = vadd.f32 %v2945_v46, %v2656_v38  ;;  %v2524_v57 = vmax.f32 %v1870_v43, 0.0 }
 0x1d7   :  { %v2791_v40 = vadd.f32 %v2790_v25, %v2521_v36  ;;  %v2522_v45 = vmax.f32 %v1862_v37, 0.0 }
 0x1d9   :  { %v2792_v51 = vadd.f32 %v2791_v40, %v2522_v45  ;;  %v3830_v41 = vpop.f32.mrb[124].mxu0 }
 0x1da   :  { %v1874_v52 = vpop.f32.mrb[125].mxu0  ;;  %v1883_v1 = vadd.f32 %v4929_v58, %v3830_v41 }
 0x1db   :  { %v2793_v59 = vadd.f32 %v2792_v51, %v2523_v47  ;;  %v1875_v62 = vadd.f32 %v4929_v58, %v1874_v52  ;;  %v3831_v63 = vpop.f32.mrb[126].mxu0 }
 0x1dc   :  { %v1877_v0 = vpop.f32.mrb[127].mxu0  ;;  %v1886_v50 = vadd.f32 %v4929_v58, %v3831_v63  ;;  %v2527_v13 = vmax.f32 %v1883_v1, 0.0 }
 0x1dd   :  { %v2525_v5 = vmax.f32 %v1875_v62, 0.0  ;;  %v2794_v6 = vadd.f32 %v2793_v59, %v2524_v57  ;;  %v1878_v9 = vadd.f32 %v4929_v58, %v1877_v0 }
 0x1de   :  { %v2528_v19 = vmax.f32 %v1886_v50, 0.0 }
 0x1df   :  { %v2795_v10 = vadd.f32 %v2794_v6, %v2525_v5  ;;  %v2526_v11 = vmax.f32 %v1878_v9, 0.0 }
 0x1e1   :  { %v2796_v14 = vadd.f32 %v2795_v10, %v2526_v11  ;;  %v3834_v15 = vpop.f32.mrb[128].mxu0 }
 0x1e2   :  { %v1890_v17 = vpop.f32.mrb[129].mxu0  ;;  %v1899_v32 = vadd.f32 %v5083_v31, %v3834_v15 }
 0x1e3   :  { %v2797_v20 = vadd.f32 %v2796_v14, %v2527_v13  ;;  %v1891_v23 = vadd.f32 %v4929_v58, %v1890_v17  ;;  %v3835_v26 = vpop.f32.mrb[130].mxu0 }
 0x1e4   :  { %v1893_v30 = vpop.f32.mrb[131].mxu0  ;;  %v1902_v37 = vadd.f32 %v5083_v31, %v3835_v26  ;;  %v2531_v40 = vmax.f32 %v1899_v32, 0.0 }
 0x1e5   :  { %v2798_v27 = vadd.f32 %v2797_v20, %v2528_v19  ;;  %v1894_v35 = vadd.f32 %v5083_v31, %v1893_v30  ;;  %v2529_v25 = vmax.f32 %v1891_v23, 0.0 }
 0x1e6   :  { %v2532_v47 = vmax.f32 %v1902_v37, 0.0 }
 0x1e7   :  { %v2799_v36 = vrot.slane %v2798_v27, 4  ;;  %v2530_v38 = vmax.f32 %v1894_v35, 0.0 }
 0x1e9   :  { %v2800_v39 = vadd.f32 %v2799_v36, %v2798_v27  ;;  %v2805_v58 = vadd.f32 %v2530_v38, %v2529_v25  ;;  %v3838_v43 = vpop.f32.mrb[132].mxu0 }
 0x1ea   :  { %v1906_v45 = vpop.f32.mrb[133].mxu0  ;;  %v1915_v57 = vadd.f32 %v5083_v31, %v3838_v43 }
 0x1eb   :  { %v2801_v46 = vrot.slane %v2800_v39, 2  ;;  %v2806_v51 = vadd.f32 %v2805_v58, %v2531_v40  ;;  %v1907_v41 = vadd.f32 %v5083_v31, %v1906_v45  ;;  %v3839_v52 = vpop.f32.mrb[134].mxu0  ;;  %v1942_v58 = vadd.f32 %v5083_v31, %v4714_v24 }
 0x1ec   :  { %v1909_v59 = vpop.f32.mrb[135].mxu0  ;;  %v1918_v9 = vadd.f32 %v5083_v31, %v3839_v52  ;;  %v2535_v11 = vmax.f32 %v1915_v57, 0.0  ;;  %v1958_v24 = vadd.f32 %v5083_v31, %v4745_v49  ;;  %v1974_v49 = vadd.f32 %v5083_v31, %v4766_v8 }
 0x1ed   :  { %v2802_v62 = vadd.f32 %v2801_v46, %v2800_v39  ;;  %v2533_v63 = vmax.f32 %v1907_v41, 0.0  ;;  %v2807_v0 = vadd.f32 %v2806_v51, %v2532_v47  ;;  %v1910_v1 = vadd.f32 %v5083_v31, %v1909_v59 }
 0x1ee   :  { %v2536_v19 = vmax.f32 %v1918_v9, 0.0  ;;  %v1947_v46 = vadd.f32 %v5083_v31, %v4699_v16  ;;  %v1950_v41 = vadd.f32 %v5083_v31, %v4709_v22  ;;  %v2542_v52 = vmax.f32 %v1942_v58, 0.0 }
 0x1ef   :  { %v2803_v5 = vrot.slane %v2802_v62, 1  ;;  %v2808_v6 = vadd.f32 %v2807_v0, %v2533_v63  ;;  %v2534_v10 = vmax.f32 %v1910_v1, 0.0  ;;  %v1963_v16 = vadd.f32 %v5083_v31, %v4733_v42 }
 0x1f0   :  { %v2543_v59 = vmax.f32 %v1947_v46, 0.0  ;;  %v2544_v63 = vmax.f32 %v1950_v41, 0.0  ;;  %v1966_v22 = vadd.f32 %v5083_v31, %v4743_v48  ;;  %v1979_v42 = vadd.f32 %v5083_v31, %v4757_v2 }
 0x1f1   :  { %v2804_v50 = vadd.f32 %v2803_v5, %v2802_v62  ;;  %v2809_v13 = vadd.f32 %v2808_v6, %v2534_v10  ;;  %v3842_v14 = vpop.f32.mrb[136].mxu0  ;;  %v2546_v6 = vmax.f32 %v1958_v24, 0.0  ;;  %v2547_v10 = vmax.f32 %v1963_v16, 0.0 }
 0x1f2   :  { %v1922_v15 = vpop.f32.mrb[137].mxu0  ;;  %v1931_v27 = vadd.f32 %v5083_v31, %v3842_v14  ;;  %v1982_v48 = vadd.f32 %v5083_v31, %v4764_v7  ;;  %v1990_v8 = vadd.f32 %v5083_v31, %v4786_v34  ;;  %v1995_v2 = vadd.f32 %v5083_v31, %v4777_v28 }
 0x1f3   :  { %v5093_v17 = vsel %vm2956_vm3, %v5035_v4, %v2804_v50  ;;  %v2810_v20 = vadd.f32 %v2809_v13, %v2535_v11  ;;  %v1923_v23 = vadd.f32 %v5083_v31, %v1922_v15  ;;  %v3843_v26 = vpop.f32.mrb[138].mxu0  ;;  %v1939_v4 = vadd.f32 %v5083_v31, %v4705_v18 }
 0x1f4   :  { %v1925_v30 = vpop.f32.mrb[139].mxu0  ;;  %v1934_v37 = vadd.f32 %v5083_v31, %v3843_v26  ;;  %v2539_v39 = vmax.f32 %v1931_v27, 0.0  ;;  %v1955_v18 = vadd.f32 %v5083_v31, %v4739_v44  ;;  %v1971_v44 = vadd.f32 %v5083_v31, %v4760_v3 }
 0x1f5   :  { %v2537_v32 = vmax.f32 %v1923_v23, 0.0  ;;  %v2811_v35 = vadd.f32 %v2810_v20, %v2536_v19  ;;  %v1926_v36 = vadd.f32 %v5083_v31, %v1925_v30  ;;  %v2541_v47 = vmax.f32 %v1939_v4, 0.0 }
 0x1f6   :  { %v2540_v43 = vmax.f32 %v1934_v37, 0.0  ;;  %v2545_v1 = vmax.f32 %v1955_v18, 0.0  ;;  %v2548_v11 = vmax.f32 %v1966_v22, 0.0  ;;  %v2549_v14 = vmax.f32 %v1971_v44, 0.0 }
 0x1f7   :  { %v2812_v25 = vadd.f32 %v2811_v35, %v2537_v32  ;;  %v2538_v38 = vmax.f32 %v1926_v36, 0.0  ;;  %v2550_v19 = vmax.f32 %v1974_v49, 0.0  ;;  %v2551_v23 = vmax.f32 %v1979_v42, 0.0 }
 0x1f8   :  { %v1987_v3 = vadd.f32 %v5083_v31, %v4780_v29  ;;  %v2552_v30 = vmax.f32 %v1982_v48, 0.0  ;;  %v1998_v7 = vadd.f32 %v5083_v31, %v4784_v33  ;;  %v2554_v36 = vmax.f32 %v1990_v8, 0.0 }
 0x1f9   :  { %v2813_v40 = vadd.f32 %v2812_v25, %v2538_v38  ;;  %v2555_v37 = vmax.f32 %v1995_v2, 0.0  ;;  %v2003_v29 = vadd.f32 %v5083_v31, %v4800_v56  ;;  %v2006_v34 = vadd.f32 %v5083_v31, %v4806_v61 }
 0x1fa   :  { %v2553_v32 = vmax.f32 %v1987_v3, 0.0  ;;  %v2556_v4 = vmax.f32 %v1998_v7, 0.0  ;;  %v2011_v28 = vadd.f32 %v5083_v31, %v4797_v55  ;;  %v2014_v33 = vadd.f32 %v5083_v31, %v4804_v60  ;;  %v4151_v3 = vld [vmem:[%s5201_s3 + $0x80] ss:$12 sps:$4 sm:$0xff]  }
 0x1fb   :  { %v2814_v45 = vadd.f32 %v2813_v40, %v2539_v39  ;;  %v2557_v40 = vmax.f32 %v2003_v29, 0.0  ;;  %v2910_v46 = vrot.slane %v4994_v21, 4  ;;  %v3005_v8 = vlaneseq }
 0x1fd   :  { %v2815_v51 = vadd.f32 %v2814_v45, %v2540_v43  ;;  %v2873_v43 = vrot.slane %v4912_v54, 4  ;;  %v2558_v45 = vmax.f32 %v2006_v34, 0.0  ;;  %v2911_v55 = vadd.f32 %v2910_v46, %v4994_v21 }
 0x1ff   :  { %v2816_v57 = vadd.f32 %v2815_v51, %v2541_v47  ;;  %v2947_v47 = vrot.slane %v5073_v53, 4  ;;  %v2559_v51 = vmax.f32 %v2011_v28, 0.0  ;;  %v2874_v61 = vadd.f32 %v2873_v43, %v4912_v54 }
 0x201   :  { %v2817_v62 = vadd.f32 %v2816_v57, %v2542_v52  ;;  %v2560_v52 = vmax.f32 %v2014_v33, 0.0 }
 0x203   :  { %v2818_v0 = vadd.f32 %v2817_v62, %v2543_v59  ;;  %v2948_v59 = vadd.f32 %v2947_v47, %v5073_v53  ;;  %v2875_v62 = vrot.slane %v2874_v61, 2 }
 0x205   :  { %v2819_v5 = vadd.f32 %v2818_v0, %v2544_v63  ;;  %v2912_v63 = vrot.slane %v2911_v55, 2  ;;  %v2949_v31 = vrot.slane %v2948_v59, 2  ;;  %v2876_v0 = vadd.f32 %v2875_v62, %v2874_v61 }
 0x207   :  { %v2820_v9 = vadd.f32 %v2819_v5, %v2545_v1  ;;  %v2913_v16 = vadd.f32 %v2912_v63, %v2911_v55  ;;  %v2950_v5 = vadd.f32 %v2949_v31, %v2948_v59 }
 0x209   :  { %v2821_v50 = vadd.f32 %v2820_v9, %v2546_v6  ;;  %v2877_v6 = vrot.slane %v2876_v0, 1  ;;  %v2914_v9 = vrot.slane %v2913_v16, 1 }
 0x20b   :  { %v2822_v13 = vadd.f32 %v2821_v50, %v2547_v10  ;;  %v2951_v10 = vrot.slane %v2950_v5, 1  ;;  %v2878_v44 = vadd.f32 %v2877_v6, %v2876_v0  ;;  %v2915_v53 = vadd.f32 %v2914_v9, %v2913_v16 }
 0x20d   :  { %v2823_v15 = vadd.f32 %v2822_v13, %v2548_v11  ;;  %v2952_v11 = vadd.f32 %v2951_v10, %v2950_v5 }
 0x20f   :  { %v2824_v20 = vadd.f32 %v2823_v15, %v2549_v14  ;;  %v4146_v15 = vld [vmem:[%s5201_s3 + $0x8] ss:$12 sps:$4 sm:$0xff]  }
 0x211   :  { %v2825_v26 = vadd.f32 %v2824_v20, %v2550_v19  ;;  %v4147_v19 = vld [vmem:[%s5201_s3 + $0x20] ss:$12 sps:$4 sm:$0xff]   ;;  %v4149_v20 = vld [vmem:[%s5201_s3 + $0x50] ss:$12 sps:$4 sm:$0xff]  }
 0x213   :  { %v2826_v27 = vadd.f32 %v2825_v26, %v2551_v23  ;;  %v4150_v23 = vld [vmem:[%s5201_s3 + $0x68] ss:$12 sps:$4 sm:$0xff]   ;;  %v4152_v26 = vld [vmem:[%s5201_s3 + $0x98] ss:$12 sps:$4 sm:$0xff]  }
 0x215   :  { %v2827_v35 = vadd.f32 %v2826_v27, %v2552_v30  ;;  %v4153_v30 = vld [vmem:[%s5201_s3 + $0xb0] ss:$12 sps:$4 sm:$0xff]   ;;  %v3006_v27 = vshrl.u32 %v3005_v8, 7 }
 0x217   :  { %v2828_v25 = vadd.f32 %v2827_v35, %v2553_v32  ;;  %v3007_v2 = vsub.s32 0, %v3006_v27  ;;  %v2998_v32 = vld [vmem:[%s5203_s4] sm:$0x7]  ;;  %v3011_v35 = vsub.s32 1, %v3006_v27  ;;  %v3015_v34 = vsub.s32 2, %v3006_v27 }
 0x219   :  { %v2829_v38 = vadd.f32 %v2828_v25, %v2554_v36  ;;  %v3008_v7 = vrot.slane %v2998_v32, %v3007_v2  ;;  %v3012_v36 = vrot.slane %v2998_v32, %v3011_v35 }
 0x21b   :  { %v2830_v39 = vadd.f32 %v2829_v38, %v2555_v37 }
 0x21d   :  { %v2831_v58 = vadd.f32 %v2830_v39, %v2556_v4  ;;  %v3016_v39 = vrot.slane %v2998_v32, %v3015_v34 }
 0x21f   :  { %v2832_v56 = vadd.f32 %v2831_v58, %v2557_v40 }
 0x221   :  { %v2833_v41 = vadd.f32 %v2832_v56, %v2558_v45 }
 0x223   :  { %v2834_v57 = vadd.f32 %v2833_v41, %v2559_v51  ;;  %v3555_v51 = vld [vmem:[%s5205_s5] ss:$0 sm:$0xff] }
 0x224   :  { %v3556_v41 = vld [vmem:[%s5206_s6] ss:$0 sm:$0xff] }
 0x225   :  { %v2835_v18 = vadd.f32 %v2834_v57, %v2560_v52  ;;  %v3557_v52 = vld [vmem:[%s5207_s7] ss:$0 sm:$0xff] }
 0x227   :  { %v2836_v60 = vrot.slane %v2835_v18, 4 }
 0x229   :  { %v2837_v24 = vadd.f32 %v2836_v60, %v2835_v18 }
 0x22b   :  { %v2838_v1 = vrot.slane %v2837_v24, 2 }
 0x22d   :  { %v2839_v22 = vadd.f32 %v2838_v1, %v2837_v24 }
 0x22f   :  { %v2840_v54 = vrot.slane %v2839_v22, 1 }
 0x231   :  { %v2841_v21 = vadd.f32 %v2840_v54, %v2839_v22 }
 0x233   :  { %v2959_v50 = vsel %vm2958_vm4, %v5093_v17, %v2841_v21  ;;  %v4148_v17 = vld [vmem:[%s5201_s3 + $0x38] ss:$12 sps:$4 sm:$0xff]  }
 0x234   :  { %v2961_v49 = vsel %vm2960_vm5, %v2959_v50, %v2878_v44 }
 0x235   :  { %v2963_v13 = vsel %vm2962_vm6, %v2961_v49, %v2915_v53 }
 0x236   :  { %v2965_v42 = vsel %vm2964_vm7, %v2963_v13, %v2952_v11 }
 0x237   :  { %v3002_v14 = vmul.f32 0.00390625, %v2965_v42 }
 0x239   :  { %v3003_v48 = vpack.c.bf16 %v3002_v14, %v3002_v14 }
 0x23b   :  { %3181 = vmatmul.mubr.bf16.vlgmr.msra.gmra.mrb[116].mxu1 %v3003_v48 }
 0x23c   :  { %3961 = vmatpush3.bf16.msra.mxu1 %v4146_v15  ;;  %3976 = vmatprep.mubr.msk.bf16.mxu1 %vm4164_vm8, %v4163_v12 }
 0x23d   :  { %3962 = vmatprep.subr.bf16.mxu1 %v4163_v12 }
 0x240   :  { %3963 = vmatpush3.bf16.msra.mxu1 %v4147_v19 }
 0x241   :  { %3964 = vmatprep.subr.bf16.mxu1 %v4163_v12 }
 0x244   :  { %3965 = vmatpush3.bf16.msra.mxu1 %v4148_v17 }
 0x245   :  { %3966 = vmatprep.subr.bf16.mxu1 %v4163_v12 }
 0x248   :  { %3967 = vmatpush3.bf16.msra.mxu1 %v4149_v20 }
 0x249   :  { %3968 = vmatprep.subr.bf16.mxu1 %v4163_v12 }
 0x24c   :  { %3969 = vmatpush3.bf16.msra.mxu1 %v4150_v23 }
 0x24d   :  { %3970 = vmatprep.subr.bf16.mxu1 %v4163_v12 }
 0x250   :  { %3971 = vmatpush3.bf16.msra.mxu1 %v4151_v3 }
 0x251   :  { %3972 = vmatprep.subr.bf16.mxu1 %v4163_v12 }
 0x254   :  { %3973 = vmatpush3.bf16.msra.mxu1 %v4152_v26 }
 0x255   :  { %3974 = vmatprep.subr.bf16.mxu1 %v4163_v12 }
 0x258   :  { %3975 = vmatpush3.bf16.msra.mxu1 %v4153_v30 }
 0x25b   :  { %3977 = vmatmul.mubr.bf16.vlgmr.msra.gmra.mrb[120].mxu1 %v3003_v48 }
 0x30e   :  { %v3182_v25 = vpop.f32.mrb[116].mxu1 }
 0x30f   :  { %v3183_v37 = vadd.f32 %v3182_v25, %v3008_v7  ;;  %v3184_v29 = vpop.f32.mrb[117].mxu1 }
 0x310   :  { %v3185_v38 = vadd.f32 %v3184_v29, %v3012_v36  ;;  %v3186_v4 = vpop.f32.mrb[118].mxu1 }
 0x311   :  { %3229 = vst [vmem:[%s5204_s8] sm:$0xff] %v3183_v37  ;;  %v3187_v12 = vpop.f32.mrb[119].mxu1 }
 0x312   :  { %3230 = vst [vmem:[%s5204_s8 + $0x8] sm:$0xff] %v3185_v38 }
 0x32e   :  { %v3223_v28 = vpop.f32.mrb[120].mxu1 }
 0x32f   :  { %v3224_v40 = vadd.f32 %v3223_v28, %v3016_v39  ;;  %v3978_v58 = vpop.f32.mrb[121].mxu1 }
 0x330   :  { %v3226_v43 = vpop.f32.mrb[122].mxu1 }
 0x331   :  { %v3554_v33 = vmul.f32 -1.442695, %v3224_v40  ;;  %v3979_v45 = vpop.f32.mrb[123].mxu1  ;;  %v3259_v18 = vmul.f32 %v3557_v52, %v3224_v40 }
 0x333   :  { %4154 = vpow2.f32 %v3554_v33 }
 0x334   :  { %4156 = vtanh.f32 %v3224_v40 }
 0x33d   :  { %v4155_v46 = vpop.eup %4154 }
 0x33e   :  { %v3234_v56 = vadd.f32 1.0, %v4155_v46  ;;  %v4157_v47 = vpop.eup %4156 }
 0x33f   :  { %v3251_v57 = vmul.f32 %v4157_v47, %v3556_v41 }
 0x340   :  { %4158 = vrcp.f32 %v3234_v56 }
 0x34a   :  { %v4159_v61 = vpop.eup %4158 }
 0x34b   :  { %v3243_v55 = vmul.f32 %v4159_v61, %v3555_v51 }
 0x34d   :  { %v3252_v59 = vadd.f32 %v3251_v57, %v3243_v55 }
 0x34f   :  { %v3260_v62 = vadd.f32 %v3259_v18, %v3252_v59 }
 0x351   :  { %3261 = vst [vmem:[%s5208_s9] sm:$0xff] %v3260_v62 }

</bundles_post_ra>
